<compile_context>
chip_gen: v5e
topology: v5e:2x2
jax: 0.10.0
libtpu: 0.0.40
codegen_flags: <defaults>
</compile_context>

<pallas_src>
import numpy as np
import jax
import jax.numpy as jnp
from jax.experimental import pallas as pl
from jax.experimental.pallas import tpu as pltpu

# ---- model geometry (fixed by the module definition) -----------------------
L_IN = 176                   # input length implied by fc1 (8 * 41)
L1, L2 = 86, 41              # lengths after (conv1,pool1) and (conv2,pool2)
C1, C2 = 6, 8                # conv channel counts
N1, N2 = C1 * L1, C2 * L2    # 516, 328 flat feature widths
N1_PAD, N2_PAD = 640, 384    # each even/odd half padded to a 128-lane multiple
F1, F1_PAD = 64, 128         # fc1 width, lane-padded
NOUT, NOUT_PAD = 5, 128      # fc2 width, lane-padded (sliced in the wrapper)

_VMEM_LIMIT_BYTES = 48 * 1024 * 1024   # below v7x's 64 MiB physical; ample everywhere


# ---- kernel -----------------------------------------------------------------
def mycnn_kernel(x_ref, m1_ref, b1_ref, m2_ref, b2_ref,
                 w1_ref, fb1_ref, w2_ref, fb2_ref, o_ref):
    f32, bf16 = jnp.float32, jnp.bfloat16
    x = x_ref[...]                                            # (TB, 176) bf16

    # conv1 -> dropout(eval: identity) -> relu -> maxpool(2):
    # one wide bf16 Toeplitz matmul; even-phase cols [0:640), odd [640:1280).
    s1 = jnp.dot(x, m1_ref[...], preferred_element_type=f32)            # (TB, 1280) f32
    h1 = jnp.maximum(jnp.maximum(s1[:, :N1_PAD], s1[:, N1_PAD:])
                     + b1_ref[...], 0.0)                                 # (TB, 640) f32

    # conv2 -> dropout(identity) -> relu -> maxpool(2)
    s2 = jnp.dot(h1.astype(bf16), m2_ref[...], preferred_element_type=f32)  # (TB, 768)
    h2 = jnp.maximum(jnp.maximum(s2[:, :N2_PAD], s2[:, N2_PAD:])
                     + b2_ref[...], 0.0)                                 # (TB, 384) f32

    # fc1 + relu (lane-padded 328->384 in, 64->128 out; padded cols stay 0)
    h3 = jnp.maximum(jnp.dot(h2.astype(bf16), w1_ref[...],
                             preferred_element_type=f32)
                     + fb1_ref[...], 0.0)                                # (TB, 128) f32

    # fc2 (output lane-padded 5 -> 128; sliced outside the kernel)
    o_ref[...] = (jnp.dot(h3.astype(bf16), w2_ref[...],
                          preferred_element_type=f32)
                  + fb2_ref[...]).astype(o_ref.dtype)                    # (TB, 128) bf16


# ---- data-independent parameter setup (numpy glue, done once) ---------------
def _conv_pool_toeplitz(w, l_in, rows, half_cols):
    """M of shape (rows, 2*half_cols) s.t. for a channel-major-flat input slab
    (B, c_in*l_in) living in the first c_in*l_in of `rows` lanes,
      (in @ M)[b, phase*half_cols + o*l_out + u] = conv1d(in)[b, o, 2*u + phase]
    i.e. columns [0:half_cols) are the even pooling phase, [half_cols:...) odd."""
    c_out, c_in, k = w.shape
    l_out = (l_in - k + 1) // 2
    m = np.zeros((rows, 2 * half_cols), np.float32)
    for phase in (0, 1):
        off = phase * half_cols
        for o in range(c_out):
            for c in range(c_in):
                for u in range(l_out):
                    base = c * l_in + 2 * u + phase
                    m[base:base + k, off + o * l_out + u] = w[o, c, :]
    return m


def prepare_params(params):
    """Hoisted preprocessing: Toeplitz expansion, lane padding, bf16 weight cast."""
    w1, b1, w2, b2, fc1_w, fc1_b, fc2_w, fc2_b = (
        np.asarray(p, np.float32) for p in params)

    m1 = _conv_pool_toeplitz(w1, L_IN, L_IN, N1_PAD)          # (176, 1280)
    b1f = np.zeros((1, N1_PAD), np.float32); b1f[0, :N1] = np.repeat(b1, L1)

    m2 = _conv_pool_toeplitz(w2, L1, N1_PAD, N2_PAD)          # (640, 768)
    b2f = np.zeros((1, N2_PAD), np.float32); b2f[0, :N2] = np.repeat(b2, L2)

    w1t = np.zeros((N2_PAD, F1_PAD), np.float32); w1t[:N2, :F1] = fc1_w.T
    fb1 = np.zeros((1, F1_PAD), np.float32);      fb1[0, :F1] = fc1_b
    w2t = np.zeros((F1_PAD, NOUT_PAD), np.float32); w2t[:F1, :NOUT] = fc2_w.T
    fb2 = np.zeros((1, NOUT_PAD), np.float32);      fb2[0, :NOUT] = fc2_b

    bf = lambda a: jnp.asarray(a, jnp.bfloat16)   # matmul operands (MXU truncates anyway)
    f32 = lambda a: jnp.asarray(a, jnp.float32)   # biases stay f32 (post-accum add)
    return (bf(m1), f32(b1f), bf(m2), f32(b2f),
            bf(w1t), f32(fb1), bf(w2t), f32(fb2))


# ---- tiling heuristics -------------------------------------------------------
def _ceil_to(a, m):
    return -(-a // m) * m


def _num_tensorcores():
    """2 for dual-TensorCore parts (v4 / v5p / v7x), else 1.  Best-effort."""
    try:
        kind = jax.devices()[0].device_kind.lower()
    except Exception:
        return 1
    if ("v4" in kind) or ("v5p" in kind) or ("7" in kind):
        return 2
    return 1


def _tb_cap():
    """Batch-tile cap.  ~13 KB/row of live f32 intermediates, plus ~1.6 MB of
    resident bf16 weights and I/O double buffers — 1024 rows fits easily on
    128-MiB-VMEM parts (v5e/v6e); cap at 512 on smaller-VMEM parts (v7x)."""
    try:
        vmem = pltpu.get_tpu_info().vmem_capacity_bytes
    except Exception:
        vmem = 64 * 1024 * 1024
    return 1024 if vmem >= 96 * 1024 * 1024 else 512


def _pick_tiling(batch):
    """Return (batch tile TB, padded batch BP = TB * grid steps)."""
    cap = _tb_cap()
    ncores = _num_tensorcores()
    rounded = _ceil_to(max(batch, 1), 8)
    if ncores > 1 and rounded >= 8 * ncores:
        # dual-TC: step count a multiple of the core count (load balance)
        steps = _ceil_to(max(pl.cdiv(rounded, cap), ncores), ncores)
    else:
        # single-TC: never split a small batch — grid steps are serial overhead
        steps = pl.cdiv(rounded, cap)
    tb = min(cap, _ceil_to(pl.cdiv(rounded, steps), 8))
    return tb, steps * tb


def _const_spec(a):
    """Grid-invariant operand: constant index_map, single-buffered."""
    idx = lambda i: (0,) * a.ndim
    try:
        return pl.BlockSpec(a.shape, idx, pipeline_mode=pl.Buffered(1))
    except (TypeError, ValueError, AttributeError):
        return pl.BlockSpec(a.shape, idx)


# ---- pallas_call wrapper -----------------------------------------------------
@jax.jit
def _mycnn_jit(x_flat, m1, b1f, m2, b2f, w1t, fb1, w2t, fb2):
    batch = x_flat.shape[0]
    tb, bp = _pick_tiling(batch)
    x_pad = jnp.pad(x_flat.astype(jnp.bfloat16), ((0, bp - batch), (0, 0)))
    weights = (m1, b1f, m2, b2f, w1t, fb1, w2t, fb2)
    out = pl.pallas_call(
        mycnn_kernel,
        out_shape=jax.ShapeDtypeStruct((bp, NOUT_PAD), jnp.bfloat16),
        grid=(bp // tb,),
        in_specs=[pl.BlockSpec((tb, L_IN), lambda i: (i, 0))]
                 + [_const_spec(a) for a in weights],
        out_specs=pl.BlockSpec((tb, NOUT_PAD), lambda i: (i, 0)),
        compiler_params=pltpu.CompilerParams(
            dimension_semantics=("parallel",),
            vmem_limit_bytes=_VMEM_LIMIT_BYTES),
    )(x_pad, *weights)
    return out[:batch, :NOUT].astype(jnp.float32)


def mycnn_forward(x_ncl, prepared):
    """x_ncl: (B, 1, 176) PyTorch NCL layout.  `prepared` = prepare_params(params)."""
    batch = x_ncl.shape[0]
    x_flat = jnp.asarray(x_ncl, jnp.float32).reshape(batch, -1)   # c_in=1 -> (B, 176)
    return _mycnn_jit(x_flat, *prepared)


# ---- pure-JAX reference (dropout in eval mode == identity) -------------------
# TODO(synk): train-mode Dropout (random masking) is not implemented; eval-mode
# dropout is the identity, which matches inference semantics of the module.
def reference_forward(x_ncl, params):
    w1, b1, w2, b2, fc1_w, fc1_b, fc2_w, fc2_b = params
    dn = ("NCH", "OIH", "NCH")
    h = jax.lax.conv_general_dilated(x_ncl, w1, (1,), "VALID", dimension_numbers=dn)
    h = jnp.maximum(h + b1[None, :, None], 0.0)
    h = h.reshape(h.shape[0], h.shape[1], -1, 2).max(-1)
    h = jax.lax.conv_general_dilated(h, w2, (1,), "VALID", dimension_numbers=dn)
    h = jnp.maximum(h + b2[None, :, None], 0.0)
    h = h.reshape(h.shape[0], h.shape[1], -1, 2).max(-1)
    h = h.reshape(h.shape[0], -1)                                  # view(-1, 8*41)
    h = jnp.maximum(jnp.dot(h, fc1_w.T) + fc1_b, 0.0)
    return jnp.dot(h, fc2_w.T) + fc2_b


if __name__ == "__main__":
    # deterministic parameters + input, all derived from PRNGKey(0)
    ks = jax.random.split(jax.random.PRNGKey(0), 9)

    def u(k, shape, fan_in):  # PyTorch-style uniform(+-1/sqrt(fan_in)) init
        b = 1.0 / np.sqrt(fan_in)
        return jax.random.uniform(k, shape, jnp.float32, -b, b)

    params = (
        u(ks[0], (C1, 1, 5), 5),      u(ks[1], (C1,), 5),        # conv1
        u(ks[2], (C2, C1, 5), 30),    u(ks[3], (C2,), 30),       # conv2
        u(ks[4], (F1, N2), N2),       u(ks[5], (F1,), N2),       # fc1
        u(ks[6], (NOUT, F1), F1),     u(ks[7], (NOUT,), F1),     # fc2
    )
    prepared = prepare_params(params)        # hoisted: built once per parameter set

    # deterministic example input, PyTorch NCL layout, small batch
    x = jax.random.normal(ks[8], (2, 1, L_IN), jnp.float32)

    y = jax.block_until_ready(mycnn_forward(x, prepared))
    y_ref = reference_forward(x, params)
    assert y.shape == (2, NOUT)
    # tolerance sized for the single-pass bf16 MXU (f32 accumulation)
    np.testing.assert_allclose(np.asarray(y), np.asarray(y_ref),
                               rtol=2e-2, atol=2e-2)
    print("KERNEL_OK")
</pallas_src>

<mosaic_0001>
module attributes {stable_mosaic.version = 11 : i64} {
  func.func @mycnn_kernel(%arg0: i32, %arg1: memref<8x176xbf16, #tpu.memory_space<vmem>>, %arg2: memref<176x1280xbf16, #tpu.memory_space<vmem>>, %arg3: memref<1x640xf32, #tpu.memory_space<vmem>>, %arg4: memref<640x768xbf16, #tpu.memory_space<vmem>>, %arg5: memref<1x384xf32, #tpu.memory_space<vmem>>, %arg6: memref<384x128xbf16, #tpu.memory_space<vmem>>, %arg7: memref<1x128xf32, #tpu.memory_space<vmem>>, %arg8: memref<128x128xbf16, #tpu.memory_space<vmem>>, %arg9: memref<1x128xf32, #tpu.memory_space<vmem>>, %arg10: memref<8x128xbf16, #tpu.memory_space<vmem>>) attributes {dimension_semantics = [#tpu.dimension_semantics<parallel>], iteration_bounds = array<i64: 1>, scalar_prefetch = 0 : i64, scratch_operands = 0 : i64, tpu.core_type = #tpu.core_type<tc>, window_params = [{transform_indices = @transform_0, window_bounds = array<i64: 8, 176>}, {pipeline_mode = #tpu.pipeline_mode<synchronous>, transform_indices = @transform_1, window_bounds = array<i64: 176, 1280>}, {pipeline_mode = #tpu.pipeline_mode<synchronous>, transform_indices = @transform_2, window_bounds = array<i64: 1, 640>}, {pipeline_mode = #tpu.pipeline_mode<synchronous>, transform_indices = @transform_3, window_bounds = array<i64: 640, 768>}, {pipeline_mode = #tpu.pipeline_mode<synchronous>, transform_indices = @transform_4, window_bounds = array<i64: 1, 384>}, {pipeline_mode = #tpu.pipeline_mode<synchronous>, transform_indices = @transform_5, window_bounds = array<i64: 384, 128>}, {pipeline_mode = #tpu.pipeline_mode<synchronous>, transform_indices = @transform_6, window_bounds = array<i64: 1, 128>}, {pipeline_mode = #tpu.pipeline_mode<synchronous>, transform_indices = @transform_7, window_bounds = array<i64: 128, 128>}, {pipeline_mode = #tpu.pipeline_mode<synchronous>, transform_indices = @transform_8, window_bounds = array<i64: 1, 128>}, {transform_indices = @transform_9, window_bounds = array<i64: 8, 128>}]} {
    %c0 = arith.constant 0 : index
    %c0_0 = arith.constant 0 : index
    %0 = vector.load %arg1[%c0, %c0_0] : memref<8x176xbf16, #tpu.memory_space<vmem>>, vector<8x176xbf16>
    %c0_1 = arith.constant 0 : index
    %c0_2 = arith.constant 0 : index
    %1 = vector.load %arg2[%c0_1, %c0_2] : memref<176x1280xbf16, #tpu.memory_space<vmem>>, vector<176x1280xbf16>
    %cst = arith.constant dense<0.000000e+00> : vector<8x1280xf32>
    %2 = tpu.matmul %0, %1, %cst {dimension_numbers = #tpu.dot_dimension_numbers<[1], [0], [0], [1], [0, 0, 1, 1], [], []>} : vector<8x176xbf16>, vector<176x1280xbf16>, vector<8x1280xf32> -> vector<8x1280xf32>
    %3 = vector.extract_strided_slice %2 {offsets = [0, 0], sizes = [8, 640], strides = [1, 1]} : vector<8x1280xf32> to vector<8x640xf32>
    %4 = vector.extract_strided_slice %2 {offsets = [0, 640], sizes = [8, 640], strides = [1, 1]} : vector<8x1280xf32> to vector<8x640xf32>
    %5 = arith.maximumf %3, %4 : vector<8x640xf32>
    %c0_3 = arith.constant 0 : index
    %c0_4 = arith.constant 0 : index
    %6 = vector.load %arg3[%c0_3, %c0_4] : memref<1x640xf32, #tpu.memory_space<vmem>>, vector<1x640xf32>
    %7 = vector.broadcast %6 : vector<1x640xf32> to vector<8x640xf32>
    %8 = arith.addf %5, %7 : vector<8x640xf32>
    %cst_5 = arith.constant 0.000000e+00 : f32
    %9 = vector.broadcast %cst_5 : f32 to vector<8x640xf32>
    %10 = arith.maximumf %8, %9 : vector<8x640xf32>
    %11 = arith.truncf %10 : vector<8x640xf32> to vector<8x640xbf16>
    %c0_6 = arith.constant 0 : index
    %c0_7 = arith.constant 0 : index
    %12 = vector.load %arg4[%c0_6, %c0_7] : memref<640x768xbf16, #tpu.memory_space<vmem>>, vector<640x768xbf16>
    %cst_8 = arith.constant dense<0.000000e+00> : vector<8x768xf32>
    %13 = tpu.matmul %11, %12, %cst_8 {dimension_numbers = #tpu.dot_dimension_numbers<[1], [0], [0], [1], [0, 0, 1, 1], [], []>} : vector<8x640xbf16>, vector<640x768xbf16>, vector<8x768xf32> -> vector<8x768xf32>
    %14 = vector.extract_strided_slice %13 {offsets = [0, 0], sizes = [8, 384], strides = [1, 1]} : vector<8x768xf32> to vector<8x384xf32>
    %15 = vector.extract_strided_slice %13 {offsets = [0, 384], sizes = [8, 384], strides = [1, 1]} : vector<8x768xf32> to vector<8x384xf32>
    %16 = arith.maximumf %14, %15 : vector<8x384xf32>
    %c0_9 = arith.constant 0 : index
    %c0_10 = arith.constant 0 : index
    %17 = vector.load %arg5[%c0_9, %c0_10] : memref<1x384xf32, #tpu.memory_space<vmem>>, vector<1x384xf32>
    %18 = vector.broadcast %17 : vector<1x384xf32> to vector<8x384xf32>
    %19 = arith.addf %16, %18 : vector<8x384xf32>
    %cst_11 = arith.constant 0.000000e+00 : f32
    %20 = vector.broadcast %cst_11 : f32 to vector<8x384xf32>
    %21 = arith.maximumf %19, %20 : vector<8x384xf32>
    %22 = arith.truncf %21 : vector<8x384xf32> to vector<8x384xbf16>
    %c0_12 = arith.constant 0 : index
    %c0_13 = arith.constant 0 : index
    %23 = vector.load %arg6[%c0_12, %c0_13] : memref<384x128xbf16, #tpu.memory_space<vmem>>, vector<384x128xbf16>
    %cst_14 = arith.constant dense<0.000000e+00> : vector<8x128xf32>
    %24 = tpu.matmul %22, %23, %cst_14 {dimension_numbers = #tpu.dot_dimension_numbers<[1], [0], [0], [1], [0, 0, 1, 1], [], []>} : vector<8x384xbf16>, vector<384x128xbf16>, vector<8x128xf32> -> vector<8x128xf32>
    %c0_15 = arith.constant 0 : index
    %c0_16 = arith.constant 0 : index
    %25 = vector.load %arg7[%c0_15, %c0_16] : memref<1x128xf32, #tpu.memory_space<vmem>>, vector<1x128xf32>
    %26 = vector.broadcast %25 : vector<1x128xf32> to vector<8x128xf32>
    %27 = arith.addf %24, %26 : vector<8x128xf32>
    %cst_17 = arith.constant 0.000000e+00 : f32
    %28 = vector.broadcast %cst_17 : f32 to vector<8x128xf32>
    %29 = arith.maximumf %27, %28 : vector<8x128xf32>
    %30 = arith.truncf %29 : vector<8x128xf32> to vector<8x128xbf16>
    %c0_18 = arith.constant 0 : index
    %c0_19 = arith.constant 0 : index
    %31 = vector.load %arg8[%c0_18, %c0_19] : memref<128x128xbf16, #tpu.memory_space<vmem>>, vector<128x128xbf16>
    %cst_20 = arith.constant dense<0.000000e+00> : vector<8x128xf32>
    %32 = tpu.matmul %30, %31, %cst_20 {dimension_numbers = #tpu.dot_dimension_numbers<[1], [0], [0], [1], [0, 0, 1, 1], [], []>} : vector<8x128xbf16>, vector<128x128xbf16>, vector<8x128xf32> -> vector<8x128xf32>
    %c0_21 = arith.constant 0 : index
    %c0_22 = arith.constant 0 : index
    %33 = vector.load %arg9[%c0_21, %c0_22] : memref<1x128xf32, #tpu.memory_space<vmem>>, vector<1x128xf32>
    %34 = vector.broadcast %33 : vector<1x128xf32> to vector<8x128xf32>
    %35 = arith.addf %32, %34 : vector<8x128xf32>
    %36 = arith.truncf %35 : vector<8x128xf32> to vector<8x128xbf16>
    %c0_23 = arith.constant 0 : index
    %c0_24 = arith.constant 0 : index
    %37 = vector.load %arg10[%c0_23, %c0_24] : memref<8x128xbf16, #tpu.memory_space<vmem>>, vector<8x128xbf16>
    tpu.vector_store %arg10[%c0_23, %c0_24], %36 {strides = array<i32>} : memref<8x128xbf16, #tpu.memory_space<vmem>>, vector<8x128xbf16>,
    return
  }
  func.func @transform_0(%arg0: i32) -> (i32, i32) {
    %c0_i32 = arith.constant 0 : i32
    %c0_i32_0 = arith.constant 0 : i32
    return %arg0, %c0_i32 : i32, i32
  }
  func.func @transform_1(%arg0: i32) -> (i32, i32) {
    %c0_i32 = arith.constant 0 : i32
    %c0_i32_0 = arith.constant 0 : i32
    %c0_i32_1 = arith.constant 0 : i32
    return %c0_i32, %c0_i32_0 : i32, i32
  }
  func.func @transform_2(%arg0: i32) -> (i32, i32) {
    %c0_i32 = arith.constant 0 : i32
    %c0_i32_0 = arith.constant 0 : i32
    %c0_i32_1 = arith.constant 0 : i32
    return %c0_i32, %c0_i32_0 : i32, i32
  }
  func.func @transform_3(%arg0: i32) -> (i32, i32) {
    %c0_i32 = arith.constant 0 : i32
    %c0_i32_0 = arith.constant 0 : i32
    %c0_i32_1 = arith.constant 0 : i32
    return %c0_i32, %c0_i32_0 : i32, i32
  }
  func.func @transform_4(%arg0: i32) -> (i32, i32) {
    %c0_i32 = arith.constant 0 : i32
    %c0_i32_0 = arith.constant 0 : i32
    %c0_i32_1 = arith.constant 0 : i32
    return %c0_i32, %c0_i32_0 : i32, i32
  }
  func.func @transform_5(%arg0: i32) -> (i32, i32) {
    %c0_i32 = arith.constant 0 : i32
    %c0_i32_0 = arith.constant 0 : i32
    %c0_i32_1 = arith.constant 0 : i32
    return %c0_i32, %c0_i32_0 : i32, i32
  }
  func.func @transform_6(%arg0: i32) -> (i32, i32) {
    %c0_i32 = arith.constant 0 : i32
    %c0_i32_0 = arith.constant 0 : i32
    %c0_i32_1 = arith.constant 0 : i32
    return %c0_i32, %c0_i32_0 : i32, i32
  }
  func.func @transform_7(%arg0: i32) -> (i32, i32) {
    %c0_i32 = arith.constant 0 : i32
    %c0_i32_0 = arith.constant 0 : i32
    %c0_i32_1 = arith.constant 0 : i32
    return %c0_i32, %c0_i32_0 : i32, i32
  }
  func.func @transform_8(%arg0: i32) -> (i32, i32) {
    %c0_i32 = arith.constant 0 : i32
    %c0_i32_0 = arith.constant 0 : i32
    %c0_i32_1 = arith.constant 0 : i32
    return %c0_i32, %c0_i32_0 : i32, i32
  }
  func.func @transform_9(%arg0: i32) -> (i32, i32) {
    %c0_i32 = arith.constant 0 : i32
    %c0_i32_0 = arith.constant 0 : i32
    return %arg0, %c0_i32 : i32, i32
  }
}

</mosaic_0001>

<bundles_post_ra>
// kernel: _mycnn_jit.1
= control target key start
LH: loop header
LB: loop body
LE: loop exit
PB: predicated region body
PF: predicated region fallthrough
CT: control target
= control target key end

     0   :  { %14 = vsyncpa [#allocation3], 0  ;;  %s5492_s0 = inlined_call_operand.vmem [shape: bf16[8,176], index: 0, kind: input, shape index: {}]   ;;  %s5493_s1 = inlined_call_operand.hbm [shape: bf16[176,1280], index: 1, kind: input, shape index: {}]   ;;  %s5494_s2 = inlined_call_operand.vmem [shape: f32[1,640], index: 2, kind: input, shape index: {}]   ;;  %s5495_s3 = inlined_call_operand.hbm [shape: bf16[640,768], index: 3, kind: input, shape index: {}]   ;;  %s5496_s4 = inlined_call_operand.vmem [shape: f32[1,384], index: 4, kind: input, shape index: {}]   ;;  %s5497_s5 = inlined_call_operand.hbm [shape: bf16[384,128], index: 5, kind: input, shape index: {}]   ;;  %s5498_s6 = inlined_call_operand.vmem [shape: f32[1,128], index: 6, kind: input, shape index: {}]   ;;  %s5499_s7 = inlined_call_operand.hbm [shape: bf16[128,128], index: 7, kind: input, shape index: {}]   ;;  %s5500_s8 = inlined_call_operand.vmem [shape: f32[1,128], index: 8, kind: input, shape index: {}]   ;;  %s5501_s9 = inlined_call_operand.vmem [shape: bf16[8,128], index: 9, kind: output, shape index: {}]  }
   0x1   :  { %15 = vsyncpa [#allocation5], 0  ;;  %s38_s11 = sshll.u32 %s5495_s3, 4  ;;  %s39_s11 = int_to_ptr.hbm [resolvable:$true] %s38_s11 }
   0x2   :  { %16 = vsyncpa [#allocation8], 0  ;;  %s5270_s12 = smov [#allocation4]   ;;  %s23_s16 = sshll.u32 %s5493_s1, 4  ;;  %s24_s16 = int_to_ptr.hbm [resolvable:$true] %s23_s16 }
   0x3   :  { %s40_s13 = sshll.u32 %s5270_s12, 4  ;;  %s5271_s17 = smov 384   ;;  %s41_s13 = int_to_ptr.vmem [resolvable:$true] %s40_s13 }
   0x4   :  { %s5272_s18 = smov 24   ;;  %s5273_s19 = smov [#allocation2]  }
   0x5   :  { %46 = dma.hbm_to_vmem [thread:$0]  %s39_s11, 30720, %s41_s13, [#allocation5], %s5271_s17, %s5271_s17, %s5272_s18  }
   0x6   :  { %s25_s20 = sshll.u32 %s5273_s19, 4  ;;  %s5274_s21 = smov 640   ;;  %s26_s20 = int_to_ptr.vmem [resolvable:$true] %s25_s20 }
   0x7   :  { %s5275_s22 = smov 40   ;;  %s53_s24 = sshll.u32 %s5497_s5, 4  ;;  %s54_s24 = int_to_ptr.hbm [resolvable:$true] %s53_s24 }
   0x8   :  { %31 = dma.hbm_to_vmem [thread:$0]  %s24_s16, 14080, %s26_s20, [#allocation3], %s5274_s21, %s5274_s21, %s5275_s22  }
   0x9   :  { %s5276_s25 = smov [#allocation6]   ;;  %s68_s28 = sshll.u32 %s5499_s7, 4  ;;  %s69_s28 = int_to_ptr.hbm [resolvable:$true] %s68_s28 }
   0xa   :  { %s55_s26 = sshll.u32 %s5276_s25, 4  ;;  %s5277_s29 = smov 64   ;;  %s56_s26 = int_to_ptr.vmem [resolvable:$true] %s55_s26 }
   0xb   :  { %s5278_s30 = smov 4   ;;  %s5279_s10 = smov [#allocation7]  }
   0xc   :  { %61 = dma.hbm_to_vmem [thread:$0]  %s54_s24, 3072, %s56_s26, [#allocation5], %s5277_s29, %s5277_s29, %s5278_s30  }
   0xd   :  { %s70_s11 = sshll.u32 %s5279_s10, 4  ;;  %s71_s11 = int_to_ptr.vmem [resolvable:$true] %s70_s11 }
   0xe   :  { %76 = dma.hbm_to_vmem [thread:$0]  %s69_s28, 1024, %s71_s11, [#allocation8], %s5277_s29, %s5277_s29, %s5278_s30  }
   0xf   :  { %5264 = dma.done.wait [#allocation3], 14080  }
  0x10   :  { %5265 = vsyncadd [#allocation3], 4294953216 }
  0x11   :  { %5266 = dma.done.wait [#allocation5], 33792  }
  0x12   :  { %5267 = vsyncadd [#allocation5], 4294933504 }
  0x13   :  { %5268 = dma.done.wait [#allocation8], 1024  }
  0x14   :  { %5269 = vsyncadd [#allocation8], 4294966272  ;;  %v3518_v0 = vld [vmem:[#allocation2 + $0x230] sm:$0xf]  ;;  %v4849_v1 = vld [vmem:[#allocation2 + $0x254] sm:$0xf0] }
  0x15   :  { %v3638_v2 = vld [vmem:[#allocation2 + $0x320] sm:$0xf]  ;;  %v3519_v3 = vor.u32 %v4849_v1, %v3518_v0  ;;  %v4879_v4 = vld [vmem:[#allocation2 + $0x344] sm:$0xf0]  ;;  %v4844_v5 = vld [vmem:[#allocation2 + $0x234] sm:$0xf] }
  0x16   :  { %v3520_v6 = vld [vmem:[#allocation2 + $0x258] sm:$0xf0]  ;;  %v3639_v7 = vor.u32 %v4879_v4, %v3638_v2  ;;  %v4874_v9 = vld [vmem:[#allocation2 + $0x324] sm:$0xf]  ;;  %v3640_v10 = vld [vmem:[#allocation2 + $0x348] sm:$0xf0] }
  0x17   :  { %v3523_v8 = vor.u32 %v4844_v5, %v3520_v6  ;;  %v3478_v11 = vld [vmem:[#allocation2 + $0x1e0] sm:$0xf]  ;;  %767 = vmatpush.bf16.msra.mxu0 %v3519_v3  ;;  %v3643_v12 = vor.u32 %v4874_v9, %v3640_v10  ;;  %v4839_v13 = vld [vmem:[#allocation2 + $0x204] sm:$0xf0]  ;;  %v3598_v14 = vld [vmem:[#allocation2 + $0x2d0] sm:$0xf] }
  0x18   :  { %v4869_v15 = vld [vmem:[#allocation2 + $0x2f4] sm:$0xf0]  ;;  %785 = vmatpush.bf16.msra.mxu1 %v3639_v7  ;;  %v3479_v16 = vor.u32 %v4839_v13, %v3478_v11  ;;  %v4834_v18 = vld [vmem:[#allocation2 + $0x1e4] sm:$0xf]  ;;  %v3480_v19 = vld [vmem:[#allocation2 + $0x208] sm:$0xf0] }
  0x19   :  { %793 = vmatpush.bf16.msra.mxu2 %v3523_v8  ;;  %v3599_v17 = vor.u32 %v4869_v15, %v3598_v14  ;;  %v4864_v20 = vld [vmem:[#allocation2 + $0x2d4] sm:$0xf]  ;;  %811 = vmatpush.bf16.msra.mxu3 %v3643_v12  ;;  %v3483_v21 = vor.u32 %v4834_v18, %v3480_v19  ;;  %v3600_v22 = vld [vmem:[#allocation2 + $0x2f8] sm:$0xf0]  ;;  %v3438_v23 = vld [vmem:[#allocation2 + $0x190] sm:$0xf] }
  0x1a   :  { %v4829_v24 = vld [vmem:[#allocation2 + $0x1b4] sm:$0xf0]  ;;  %v3603_v25 = vor.u32 %v4864_v20, %v3600_v22  ;;  %v3558_v26 = vld [vmem:[#allocation2 + $0x280] sm:$0xf]  ;;  %v4859_v27 = vld [vmem:[#allocation2 + $0x2a4] sm:$0xf0] }
  0x1b   :  { %v4824_v28 = vld [vmem:[#allocation2 + $0x194] sm:$0xf]  ;;  %768 = vmatpush.bf16.msra.mxu0 %v3479_v16  ;;  %v3439_v29 = vor.u32 %v4829_v24, %v3438_v23  ;;  %v3440_v30 = vld [vmem:[#allocation2 + $0x1b8] sm:$0xf0]  ;;  %v4854_v31 = vld [vmem:[#allocation2 + $0x284] sm:$0xf]  ;;  %v3559_v33 = vor.u32 %v4859_v27, %v3558_v26 }
  0x1c   :  { %v3560_v32 = vld [vmem:[#allocation2 + $0x2a8] sm:$0xf0]  ;;  %786 = vmatpush.bf16.msra.mxu1 %v3599_v17  ;;  %v3443_v34 = vor.u32 %v4824_v28, %v3440_v30  ;;  %v3526_v35 = vld [vmem:[#allocation2 + $0x238] sm:$0xf]  ;;  %v4850_v36 = vld [vmem:[#allocation2 + $0x25c] sm:$0xf0] }
  0x1d   :  { %794 = vmatpush.bf16.msra.mxu2 %v3483_v21  ;;  %v3646_v37 = vld [vmem:[#allocation2 + $0x328] sm:$0xf]  ;;  %812 = vmatpush.bf16.msra.mxu3 %v3603_v25  ;;  %v3563_v38 = vor.u32 %v4854_v31, %v3560_v32  ;;  %v3527_v39 = vor.u32 %v4850_v36, %v3526_v35  ;;  %v4880_v40 = vld [vmem:[#allocation2 + $0x34c] sm:$0xf0]  ;;  %v3398_v41 = vld [vmem:[#allocation2 + $0x140] sm:$0xf] }
  0x1e   :  { %v4819_v42 = vld [vmem:[#allocation2 + $0x164] sm:$0xf0]  ;;  %v3647_v43 = vor.u32 %v4880_v40, %v3646_v37  ;;  %v4814_v44 = vld [vmem:[#allocation2 + $0x144] sm:$0xf]  ;;  %v3400_v45 = vld [vmem:[#allocation2 + $0x168] sm:$0xf0] }
  0x1f   :  { %v3486_v46 = vld [vmem:[#allocation2 + $0x1e8] sm:$0xf]  ;;  %769 = vmatpush.bf16.msra.mxu0 %v3439_v29  ;;  %v3399_v47 = vor.u32 %v4819_v42, %v3398_v41  ;;  %v4840_v48 = vld [vmem:[#allocation2 + $0x20c] sm:$0xf0]  ;;  %v3606_v49 = vld [vmem:[#allocation2 + $0x2d8] sm:$0xf]  ;;  %v3403_v51 = vor.u32 %v4814_v44, %v3400_v45 }
  0x20   :  { %v4870_v50 = vld [vmem:[#allocation2 + $0x2fc] sm:$0xf0]  ;;  %787 = vmatpush.bf16.msra.mxu1 %v3559_v33  ;;  %v3358_v52 = vld [vmem:[#allocation2 + $0xf0] sm:$0xf]  ;;  %v4809_v53 = vld [vmem:[#allocation2 + $0x114] sm:$0xf0]  ;;  %v3487_v55 = vor.u32 %v4840_v48, %v3486_v46 }
  0x21   :  { %795 = vmatpush.bf16.msra.mxu2 %v3443_v34  ;;  %v5345_v54 = vld [vmem:[%s5492_s0] sm:$0xff]  ;;  %813 = vmatpush.bf16.msra.mxu3 %v3563_v38  ;;  %v4804_v57 = vld [vmem:[#allocation2 + $0xf4] sm:$0xf]  ;;  %v3360_v58 = vld [vmem:[#allocation2 + $0x118] sm:$0xf0]  ;;  %v3607_v59 = vor.u32 %v4870_v50, %v3606_v49  ;;  %vm763_vm0 = vcmask 392192   ;;  %v3359_v62 = vor.u32 %v4809_v53, %v3358_v52 }
  0x22   :  { %v209_v56 = vunpack.c.h.b16 %v5345_v54  ;;  %v3446_v60 = vld [vmem:[#allocation2 + $0x198] sm:$0xf]  ;;  %v4830_v61 = vld [vmem:[#allocation2 + $0x1bc] sm:$0xf0]  ;;  %v3566_v0 = vld [vmem:[#allocation2 + $0x288] sm:$0xf]  ;;  %v3363_v3 = vor.u32 %v4804_v57, %v3360_v58  ;;  %v208_v41 = vunpack.c.l.b16 %v5345_v54 }
  0x23   :  { %770 = vmatpush.bf16.msra.mxu0 %v3399_v47  ;;  %v4860_v1 = vld [vmem:[#allocation2 + $0x2ac] sm:$0xf0]  ;;  %v4845_v2 = vld [vmem:[#allocation2 + $0x23c] sm:$0xf]  ;;  %v3528_v4 = vld [vmem:[#allocation2 + $0x260] sm:$0xf0]  ;;  %v3447_v7 = vor.u32 %v4830_v61, %v3446_v60 }
  0x24   :  { %819 = vmatpush.bf16.msrb.mxu1 %v3527_v39  ;;  %v5348_v63 = vpack.c.b16 %v209_v56, %v209_v56  ;;  %v3318_v5 = vld [vmem:[#allocation2 + $0xa0] sm:$0xf]  ;;  %v4799_v6 = vld [vmem:[#allocation2 + $0xc4] sm:$0xf0]  ;;  %v4794_v8 = vld [vmem:[#allocation2 + $0xa4] sm:$0xf]  ;;  %v3567_v10 = vor.u32 %v4860_v1, %v3566_v0  ;;  %v3531_v13 = vor.u32 %v4845_v2, %v3528_v4  ;;  %v5355_v53 = vpack.c.b16 %v208_v41, %v208_v41 }
  0x25   :  { %837 = vmatpush.bf16.msrb.mxu3 %v3647_v43  ;;  %796 = vmatpush.bf16.msra.mxu2 %v3403_v51  ;;  %v3320_v9 = vld [vmem:[#allocation2 + $0xc8] sm:$0xf0]  ;;  %v3406_v11 = vld [vmem:[#allocation2 + $0x148] sm:$0xf]  ;;  %v4820_v12 = vld [vmem:[#allocation2 + $0x16c] sm:$0xf0]  ;;  %v3319_v14 = vor.u32 %v4799_v6, %v3318_v5 }
  0x26   :  { %3677 = vmatmul.msk.bf16.vlgmr.msra.gmra.mxu3 %vm763_vm0, %v5348_v63  ;;  %3676 = vmatmul.msk.bf16.vlgmr.msra.gmra.mxu1 %vm763_vm0, %v5348_v63  ;;  %v4835_v15 = vld [vmem:[#allocation2 + $0x1ec] sm:$0xf]  ;;  %v3323_v16 = vor.u32 %v4794_v8, %v3320_v9  ;;  %v3488_v17 = vld [vmem:[#allocation2 + $0x210] sm:$0xf0]  ;;  %v3278_v18 = vld [vmem:[#allocation2 + $0x50] sm:$0xf]  ;;  %v3407_v20 = vor.u32 %v4820_v12, %v3406_v11 }
  0x27   :  { %771 = vmatpush.bf16.msra.mxu0 %v3359_v62  ;;  %v4789_v19 = vld [vmem:[#allocation2 + $0x74] sm:$0xf0]  ;;  %v4784_v21 = vld [vmem:[#allocation2 + $0x54] sm:$0xf]  ;;  %v3280_v22 = vld [vmem:[#allocation2 + $0x78] sm:$0xf0]  ;;  %v3491_v25 = vor.u32 %v4835_v15, %v3488_v17 }
  0x28   :  { %820 = vmatpush.bf16.msrb.mxu1 %v3487_v55  ;;  %v3366_v23 = vld [vmem:[#allocation2 + $0xf8] sm:$0xf]  ;;  %v4810_v24 = vld [vmem:[#allocation2 + $0x11c] sm:$0xf0]  ;;  %v3279_v26 = vor.u32 %v4789_v19, %v3278_v18  ;;  %v4825_v27 = vld [vmem:[#allocation2 + $0x19c] sm:$0xf]  ;;  %v3283_v30 = vor.u32 %v4784_v21, %v3280_v22 }
  0x29   :  { %838 = vmatpush.bf16.msrb.mxu3 %v3607_v59  ;;  %797 = vmatpush.bf16.msra.mxu2 %v3363_v3  ;;  %v3448_v28 = vld [vmem:[#allocation2 + $0x1c0] sm:$0xf0]  ;;  %v3238_v29 = vld [vmem:[#allocation2] sm:$0xf]  ;;  %v4779_v31 = vld [vmem:[#allocation2 + $0x24] sm:$0xf0]  ;;  %v3367_v34 = vor.u32 %v4810_v24, %v3366_v23 }
  0x2a   :  { %v4774_v32 = vld [vmem:[#allocation2 + $0x4] sm:$0xf]  ;;  %v3240_v33 = vld [vmem:[#allocation2 + $0x28] sm:$0xf0]  ;;  %v3326_v35 = vld [vmem:[#allocation2 + $0xa8] sm:$0xf]  ;;  %v3451_v42 = vor.u32 %v4825_v27, %v3448_v28  ;;  %v3239_v43 = vor.u32 %v4779_v31, %v3238_v29 }
  0x2b   :  { %772 = vmatpush.bf16.msra.mxu0 %v3319_v14  ;;  %v4875_v36 = vld [vmem:[#allocation2 + $0x32c] sm:$0xf]  ;;  %v3648_v37 = vld [vmem:[#allocation2 + $0x350] sm:$0xf0]  ;;  %v4800_v38 = vld [vmem:[#allocation2 + $0xcc] sm:$0xf0]  ;;  %v3243_v44 = vor.u32 %v4774_v32, %v3240_v33 }
  0x2c   :  { %821 = vmatpush.bf16.msrb.mxu1 %v3447_v7  ;;  %v3534_v39 = vld [vmem:[#allocation2 + $0x240] sm:$0xf]  ;;  %v4851_v40 = vld [vmem:[#allocation2 + $0x264] sm:$0xf0]  ;;  %v4815_v45 = vld [vmem:[#allocation2 + $0x14c] sm:$0xf]  ;;  %v3651_v47 = vor.u32 %v4875_v36, %v3648_v37  ;;  %v3327_v48 = vor.u32 %v4800_v38, %v3326_v35 }
  0x2d   :  { %839 = vmatpush.bf16.msrb.mxu3 %v3567_v10  ;;  %798 = vmatpush.bf16.msra.mxu2 %v3323_v16  ;;  %v3408_v46 = vld [vmem:[#allocation2 + $0x170] sm:$0xf0]  ;;  %v3535_v49 = vor.u32 %v4851_v40, %v3534_v39  ;;  %v3286_v50 = vld [vmem:[#allocation2 + $0x58] sm:$0xf]  ;;  %v4865_v51 = vld [vmem:[#allocation2 + $0x2dc] sm:$0xf] }
  0x2e   :  { %v3608_v52 = vld [vmem:[#allocation2 + $0x300] sm:$0xf0]  ;;  %v4790_v55 = vld [vmem:[#allocation2 + $0x7c] sm:$0xf0]  ;;  %v3494_v56 = vld [vmem:[#allocation2 + $0x1f0] sm:$0xf]  ;;  %v3411_v57 = vor.u32 %v4815_v45, %v3408_v46 }
  0x2f   :  { %773 = vmatpush.bf16.msra.mxu0 %v3279_v26  ;;  %v4841_v54 = vld [vmem:[#allocation2 + $0x214] sm:$0xf0]  ;;  %v4805_v58 = vld [vmem:[#allocation2 + $0xfc] sm:$0xf]  ;;  %v3368_v59 = vld [vmem:[#allocation2 + $0x120] sm:$0xf0]  ;;  %v3611_v60 = vor.u32 %v4865_v51, %v3608_v52  ;;  %v3287_v62 = vor.u32 %v4790_v55, %v3286_v50 }
  0x30   :  { %822 = vmatpush.bf16.msrb.mxu1 %v3407_v20  ;;  %v3246_v61 = vld [vmem:[#allocation2 + $0x8] sm:$0xf]  ;;  %v3495_v0 = vor.u32 %v4841_v54, %v3494_v56  ;;  %v4780_v1 = vld [vmem:[#allocation2 + $0x2c] sm:$0xf0]  ;;  %v4855_v2 = vld [vmem:[#allocation2 + $0x28c] sm:$0xf]  ;;  %v3371_v7 = vor.u32 %v4805_v58, %v3368_v59 }
  0x31   :  { %845 = vmatpush.bf16.msra.mxu3 %v3531_v13  ;;  %799 = vmatpush.bf16.msra.mxu2 %v3283_v30  ;;  %v3568_v3 = vld [vmem:[#allocation2 + $0x2b0] sm:$0xf0]  ;;  %v3454_v4 = vld [vmem:[#allocation2 + $0x1a0] sm:$0xf]  ;;  %v4831_v5 = vld [vmem:[#allocation2 + $0x1c4] sm:$0xf0]  ;;  %v3247_v14 = vor.u32 %v4780_v1, %v3246_v61 }
  0x32   :  { %v4846_v6 = vld [vmem:[#allocation2 + $0x244] sm:$0xf]  ;;  %v3536_v8 = vld [vmem:[#allocation2 + $0x268] sm:$0xf0]  ;;  %v3654_v9 = vld [vmem:[#allocation2 + $0x330] sm:$0xf]  ;;  %v3571_v13 = vor.u32 %v4855_v2, %v3568_v3  ;;  %v3455_v15 = vor.u32 %v4831_v5, %v3454_v4 }
  0x33   :  { %774 = vmatpush.bf16.msra.mxu0 %v3239_v43  ;;  %v4881_v10 = vld [vmem:[#allocation2 + $0x354] sm:$0xf0]  ;;  %v4795_v11 = vld [vmem:[#allocation2 + $0xac] sm:$0xf]  ;;  %v3328_v12 = vld [vmem:[#allocation2 + $0xd0] sm:$0xf0]  ;;  %v3539_v18 = vor.u32 %v4846_v6, %v3536_v8 }
  0x34   :  { %823 = vmatpush.bf16.msrb.mxu1 %v3367_v34  ;;  %v3414_v16 = vld [vmem:[#allocation2 + $0x150] sm:$0xf]  ;;  %v4821_v17 = vld [vmem:[#allocation2 + $0x174] sm:$0xf0]  ;;  %v3655_v19 = vor.u32 %v4881_v10, %v3654_v9  ;;  %v4836_v20 = vld [vmem:[#allocation2 + $0x1f4] sm:$0xf]  ;;  %v3331_v21 = vor.u32 %v4795_v11, %v3328_v12 }
  0x35   :  { %846 = vmatpush.bf16.msra.mxu3 %v3491_v25  ;;  %800 = vmatpush.bf16.msra.mxu2 %v3243_v44  ;;  %v3496_v22 = vld [vmem:[#allocation2 + $0x218] sm:$0xf0]  ;;  %v3614_v23 = vld [vmem:[#allocation2 + $0x2e0] sm:$0xf]  ;;  %v4871_v24 = vld [vmem:[#allocation2 + $0x304] sm:$0xf0]  ;;  %v3415_v27 = vor.u32 %v4821_v17, %v3414_v16 }
  0x36   :  { %775 = vmatmul.bf16.vlgmr.msra.gmra.mxu0 %v5355_v53  ;;  %3678 = vmatmul.msk.bf16.vlgmr.msrb.gmra.mxu3 %vm763_vm0, %v5348_v63  ;;  %v4785_v25 = vld [vmem:[#allocation2 + $0x5c] sm:$0xf]  ;;  %v3288_v26 = vld [vmem:[#allocation2 + $0x80] sm:$0xf0]  ;;  %v3374_v28 = vld [vmem:[#allocation2 + $0x100] sm:$0xf]  ;;  %v3499_v30 = vor.u32 %v4836_v20, %v3496_v22  ;;  %v3615_v32 = vor.u32 %v4871_v24, %v3614_v23 }
  0x37   :  { %863 = vmatpush.bf16.msrb.mxu0 %v3651_v47  ;;  %v4811_v29 = vld [vmem:[#allocation2 + $0x124] sm:$0xf0]  ;;  %v4775_v31 = vld [vmem:[#allocation2 + $0xc] sm:$0xf]  ;;  %v4826_v33 = vld [vmem:[#allocation2 + $0x1a4] sm:$0xf]  ;;  %v3291_v34 = vor.u32 %v4785_v25, %v3288_v26 }
  0x38   :  { %824 = vmatpush.bf16.msrb.mxu1 %v3327_v48  ;;  %801 = vmatmul.bf16.vlgmr.msra.gmra.mxu2 %v5355_v53  ;;  %v3456_v35 = vld [vmem:[#allocation2 + $0x1c8] sm:$0xf0]  ;;  %v3574_v36 = vld [vmem:[#allocation2 + $0x290] sm:$0xf]  ;;  %v4861_v37 = vld [vmem:[#allocation2 + $0x2b4] sm:$0xf0]  ;;  %v3375_v41 = vor.u32 %v4811_v29, %v3374_v28 }
  0x39   :  { %847 = vmatpush.bf16.msra.mxu3 %v3451_v42  ;;  %871 = vmatpush.bf16.msrb.mxu2 %v3535_v49  ;;  %v3248_v38 = vld [vmem:[#allocation2 + $0x30] sm:$0xf0]  ;;  %v3656_v40 = vld [vmem:[#allocation2 + $0x358] sm:$0xf0]  ;;  %v3542_v42 = vld [vmem:[#allocation2 + $0x248] sm:$0xf]  ;;  %v3459_v46 = vor.u32 %v4826_v33, %v3456_v35  ;;  %v3575_v47 = vor.u32 %v4861_v37, %v3574_v36 }
  0x3a   :  { %v4876_v39 = vld [vmem:[#allocation2 + $0x334] sm:$0xf]  ;;  %v4852_v43 = vld [vmem:[#allocation2 + $0x26c] sm:$0xf0]  ;;  %v4801_v45 = vld [vmem:[#allocation2 + $0xd4] sm:$0xf0]  ;;  %v3251_v48 = vor.u32 %v4775_v31, %v3248_v38 }
  0x3b   :  { %864 = vmatpush.bf16.msrb.mxu0 %v3611_v60  ;;  %v3334_v44 = vld [vmem:[#allocation2 + $0xb0] sm:$0xf]  ;;  %v4816_v49 = vld [vmem:[#allocation2 + $0x154] sm:$0xf]  ;;  %v3416_v50 = vld [vmem:[#allocation2 + $0x178] sm:$0xf0]  ;;  %v3659_v51 = vor.u32 %v4876_v39, %v3656_v40  ;;  %v3543_v52 = vor.u32 %v4852_v43, %v3542_v42 }
  0x3c   :  { %825 = vmatpush.bf16.msrb.mxu1 %v3287_v62  ;;  %v4866_v55 = vld [vmem:[#allocation2 + $0x2e4] sm:$0xf]  ;;  %v3616_v56 = vld [vmem:[#allocation2 + $0x308] sm:$0xf0]  ;;  %v3335_v54 = vor.u32 %v4801_v45, %v3334_v44  ;;  %v4842_v58 = vld [vmem:[#allocation2 + $0x21c] sm:$0xf0]  ;;  %v3419_v61 = vor.u32 %v4816_v49, %v3416_v50 }
  0x3d   :  { %848 = vmatpush.bf16.msra.mxu3 %v3411_v57  ;;  %872 = vmatpush.bf16.msrb.mxu2 %v3495_v0  ;;  %v3502_v57 = vld [vmem:[#allocation2 + $0x1f8] sm:$0xf]  ;;  %v3294_v59 = vld [vmem:[#allocation2 + $0x60] sm:$0xf]  ;;  %v4791_v60 = vld [vmem:[#allocation2 + $0x84] sm:$0xf0]  ;;  %v3619_v1 = vor.u32 %v4866_v55, %v3616_v56 }
  0x3e   :  { %v4806_v62 = vld [vmem:[#allocation2 + $0x104] sm:$0xf]  ;;  %v3376_v0 = vld [vmem:[#allocation2 + $0x128] sm:$0xf0]  ;;  %v3503_v2 = vor.u32 %v4842_v58, %v3502_v57  ;;  %v3462_v3 = vld [vmem:[#allocation2 + $0x1a8] sm:$0xf]  ;;  %v3295_v6 = vor.u32 %v4791_v60, %v3294_v59 }
  0x3f   :  { %865 = vmatpush.bf16.msrb.mxu0 %v3571_v13  ;;  %v4856_v4 = vld [vmem:[#allocation2 + $0x294] sm:$0xf]  ;;  %v3576_v5 = vld [vmem:[#allocation2 + $0x2b8] sm:$0xf0]  ;;  %v3254_v8 = vld [vmem:[#allocation2 + $0x10] sm:$0xf]  ;;  %v3379_v10 = vor.u32 %v4806_v62, %v3376_v0 }
  0x40   :  { %826 = vmatpush.bf16.msrb.mxu1 %v3247_v14  ;;  %v4781_v9 = vld [vmem:[#allocation2 + $0x34] sm:$0xf0]  ;;  %v4796_v11 = vld [vmem:[#allocation2 + $0xb4] sm:$0xf]  ;;  %v4882_v13 = vld [vmem:[#allocation2 + $0x35c] sm:$0xf0] }
  0x41   :  { %849 = vmatpush.bf16.msra.mxu3 %v3371_v7  ;;  %873 = vmatpush.bf16.msrb.mxu2 %v3455_v15  ;;  %v4832_v7 = vld [vmem:[#allocation2 + $0x1cc] sm:$0xf0]  ;;  %v3662_v12 = vld [vmem:[#allocation2 + $0x338] sm:$0xf]  ;;  %v3336_v14 = vld [vmem:[#allocation2 + $0xd8] sm:$0xf0]  ;;  %v3579_v15 = vor.u32 %v4856_v4, %v3576_v5 }
  0x42   :  { %v3550_v16 = vld [vmem:[#allocation2 + $0x250] sm:$0xf]  ;;  %v4853_v17 = vld [vmem:[#allocation2 + $0x274] sm:$0xf0]  ;;  %v3663_v22 = vor.u32 %v4882_v13, %v3662_v12  ;;  %v3339_v23 = vor.u32 %v4796_v11, %v3336_v14  ;;  %v4786_v25 = vld [vmem:[#allocation2 + $0x64] sm:$0xf] }
  0x43   :  { %897 = vmatpush.bf16.msra.mxu0 %v3539_v18  ;;  %827 = vmatmul.bf16.vlgmr.msrb.gmra.mxu1 %v5355_v53  ;;  %v3463_v18 = vor.u32 %v4832_v7, %v3462_v3  ;;  %v3422_v20 = vld [vmem:[#allocation2 + $0x158] sm:$0xf]  ;;  %v3551_v24 = vor.u32 %v4853_v17, %v3550_v16  ;;  %v3622_v26 = vld [vmem:[#allocation2 + $0x2e8] sm:$0xf]  ;;  %v3296_v28 = vld [vmem:[#allocation2 + $0x88] sm:$0xf0] }
  0x44   :  { %889 = vmatpush.bf16.msra.mxu1 %v3655_v19  ;;  %v3255_v19 = vor.u32 %v4781_v9, %v3254_v8  ;;  %v3510_v29 = vld [vmem:[#allocation2 + $0x200] sm:$0xf]  ;;  %v4812_v33 = vld [vmem:[#allocation2 + $0x12c] sm:$0xf0]  ;;  %v3299_v35 = vor.u32 %v4786_v25, %v3296_v28  ;;  %v4776_v37 = vld [vmem:[#allocation2 + $0x14] sm:$0xf] }
  0x45   :  { %850 = vmatpush.bf16.msra.mxu3 %v3331_v21  ;;  %874 = vmatpush.bf16.msrb.mxu2 %v3415_v27  ;;  %v4822_v21 = vld [vmem:[#allocation2 + $0x17c] sm:$0xf0]  ;;  %v4872_v27 = vld [vmem:[#allocation2 + $0x30c] sm:$0xf0]  ;;  %v3582_v38 = vld [vmem:[#allocation2 + $0x298] sm:$0xf] }
  0x46   :  { %3679 = vmatmul.msk.bf16.vlgmr.msrb.gmra.mxu0 %vm763_vm0, %v5348_v63  ;;  %v3423_v31 = vor.u32 %v4822_v21, %v3422_v20  ;;  %v4862_v39 = vld [vmem:[#allocation2 + $0x2bc] sm:$0xf0]  ;;  %v3256_v40 = vld [vmem:[#allocation2 + $0x38] sm:$0xf0]  ;;  %v4833_v42 = vld [vmem:[#allocation2 + $0x1d4] sm:$0xf0] }
  0x47   :  { %898 = vmatpush.bf16.msra.mxu0 %v3499_v30  ;;  %v4843_v30 = vld [vmem:[#allocation2 + $0x224] sm:$0xf0]  ;;  %v4877_v44 = vld [vmem:[#allocation2 + $0x33c] sm:$0xf]  ;;  %v3664_v45 = vld [vmem:[#allocation2 + $0x360] sm:$0xf0]  ;;  %v3259_v49 = vor.u32 %v4776_v37, %v3256_v40 }
  0x48   :  { %890 = vmatpush.bf16.msra.mxu1 %v3615_v32  ;;  %v3382_v32 = vld [vmem:[#allocation2 + $0x108] sm:$0xf]  ;;  %v3511_v36 = vor.u32 %v4843_v30, %v3510_v29  ;;  %v3624_v57 = vld [vmem:[#allocation2 + $0x310] sm:$0xf0]  ;;  %v4792_v59 = vld [vmem:[#allocation2 + $0x8c] sm:$0xf0] }
  0x49   :  { %851 = vmatpush.bf16.msra.mxu3 %v3291_v34  ;;  %875 = vmatpush.bf16.msrb.mxu2 %v3375_v41  ;;  %v3623_v34 = vor.u32 %v4872_v27, %v3622_v26  ;;  %v3470_v41 = vld [vmem:[#allocation2 + $0x1b0] sm:$0xf]  ;;  %v3383_v43 = vor.u32 %v4812_v33, %v3382_v32  ;;  %v4823_v55 = vld [vmem:[#allocation2 + $0x184] sm:$0xf0]  ;;  %v4847_v60 = vld [vmem:[#allocation2 + $0x24c] sm:$0xf] }
  0x4a   :  { %v3471_v50 = vor.u32 %v4833_v42, %v3470_v41  ;;  %v3302_v58 = vld [vmem:[#allocation2 + $0x68] sm:$0xf]  ;;  %v3262_v0 = vld [vmem:[#allocation2 + $0x18] sm:$0xf]  ;;  %v4782_v5 = vld [vmem:[#allocation2 + $0x3c] sm:$0xf0] }
  0x4b   :  { %899 = vmatpush.bf16.msra.mxu0 %v3459_v46  ;;  %v3342_v46 = vld [vmem:[#allocation2 + $0xb8] sm:$0xf]  ;;  %v3303_v4 = vor.u32 %v4792_v59, %v3302_v58  ;;  %v3584_v7 = vld [vmem:[#allocation2 + $0x2c0] sm:$0xf0]  ;;  %v4837_v9 = vld [vmem:[#allocation2 + $0x1fc] sm:$0xf] }
  0x4c   :  { %891 = vmatpush.bf16.msra.mxu1 %v3575_v47  ;;  %v4802_v47 = vld [vmem:[#allocation2 + $0xdc] sm:$0xf0]  ;;  %v4813_v3 = vld [vmem:[#allocation2 + $0x134] sm:$0xf0]  ;;  %v3552_v11 = vld [vmem:[#allocation2 + $0x278] sm:$0xf0] }
  0x4d   :  { %852 = vmatpush.bf16.msra.mxu3 %v3251_v48  ;;  %876 = vmatpush.bf16.msrb.mxu2 %v3335_v54  ;;  %v3583_v48 = vor.u32 %v4862_v39, %v3582_v38  ;;  %v3343_v56 = vor.u32 %v4802_v47, %v3342_v46  ;;  %v4867_v54 = vld [vmem:[#allocation2 + $0x2ec] sm:$0xf]  ;;  %v3504_v12 = vld [vmem:[#allocation2 + $0x220] sm:$0xf0]  ;;  %v3670_v14 = vld [vmem:[#allocation2 + $0x340] sm:$0xf] }
  0x4e   :  { %v3350_v17 = vld [vmem:[#allocation2 + $0xc0] sm:$0xf]  ;;  %v3507_v21 = vor.u32 %v4837_v9, %v3504_v12  ;;  %v3512_v25 = vld [vmem:[#allocation2 + $0x228] sm:$0xf0]  ;;  %v3464_v26 = vld [vmem:[#allocation2 + $0x1d0] sm:$0xf0] }
  0x4f   :  { %900 = vmatpush.bf16.msra.mxu0 %v3419_v61  ;;  %v3544_v61 = vld [vmem:[#allocation2 + $0x270] sm:$0xf0]  ;;  %v3630_v28 = vld [vmem:[#allocation2 + $0x2f0] sm:$0xf]  ;;  %v4873_v29 = vld [vmem:[#allocation2 + $0x314] sm:$0xf0] }
  0x50   :  { %915 = vmatpush.bf16.msrb.mxu1 %v3659_v51  ;;  %853 = vmatmul.bf16.vlgmr.msra.gmra.mxu3 %v5355_v53  ;;  %v3667_v51 = vor.u32 %v4877_v44, %v3664_v45  ;;  %v3547_v8 = vor.u32 %v4847_v60, %v3544_v61  ;;  %v3310_v30 = vld [vmem:[#allocation2 + $0x70] sm:$0xf]  ;;  %v3472_v37 = vld [vmem:[#allocation2 + $0x1d8] sm:$0xf0]  ;;  %v3424_v38 = vld [vmem:[#allocation2 + $0x180] sm:$0xf0] }
  0x51   :  { %923 = vmatpush.bf16.msrb.mxu3 %v3543_v52  ;;  %877 = vmatpush.bf16.msrb.mxu2 %v3295_v6  ;;  %v3430_v52 = vld [vmem:[#allocation2 + $0x160] sm:$0xf]  ;;  %v4857_v6 = vld [vmem:[#allocation2 + $0x29c] sm:$0xf]  ;;  %v4863_v41 = vld [vmem:[#allocation2 + $0x2c4] sm:$0xf0] }
  0x52   :  { %v3431_v62 = vor.u32 %v4823_v55, %v3430_v52  ;;  %v3587_v16 = vor.u32 %v4857_v6, %v3584_v7  ;;  %v3590_v40 = vld [vmem:[#allocation2 + $0x2a0] sm:$0xf]  ;;  %v4818_v47 = vld [vmem:[#allocation2 + $0x164] sm:$0xf]  ;;  %v4777_v6 = vld [vmem:[#allocation2 + $0x1c] sm:$0xf] }
  0x53   :  { %901 = vmatpush.bf16.msra.mxu0 %v3379_v10  ;;  %3680 = vmatmul.msk.bf16.vlgmr.msra.gmra.mxu1 %vm763_vm0, %v5348_v63  ;;  %v4848_v10 = vld [vmem:[#allocation2 + $0x254] sm:$0xf]  ;;  %v3270_v42 = vld [vmem:[#allocation2 + $0x20] sm:$0xf]  ;;  %v3591_v46 = vor.u32 %v4863_v41, %v3590_v40  ;;  %v3344_v58 = vld [vmem:[#allocation2 + $0xe0] sm:$0xf0] }
  0x54   :  { %916 = vmatpush.bf16.msrb.mxu1 %v3619_v1  ;;  %v3627_v1 = vor.u32 %v4867_v54, %v3624_v57  ;;  %v3555_v20 = vor.u32 %v4848_v10, %v3552_v11  ;;  %v3392_v54 = vld [vmem:[#allocation2 + $0x138] sm:$0xf0]  ;;  %v4798_v61 = vld [vmem:[#allocation2 + $0xc4] sm:$0xf]  ;;  %v3672_v9 = vld [vmem:[#allocation2 + $0x368] sm:$0xf0] }
  0x55   :  { %924 = vmatpush.bf16.msrb.mxu3 %v3503_v2  ;;  %878 = vmatpush.bf16.msrb.mxu2 %v3255_v19  ;;  %v3390_v2 = vld [vmem:[#allocation2 + $0x110] sm:$0xf]  ;;  %v3263_v19 = vor.u32 %v4782_v5, %v3262_v0  ;;  %v4797_v57 = vld [vmem:[#allocation2 + $0xbc] sm:$0xf]  ;;  %v4787_v0 = vld [vmem:[#allocation2 + $0x6c] sm:$0xf] }
  0x56   :  { %v3391_v13 = vor.u32 %v4813_v3, %v3390_v2  ;;  %v3347_v60 = vor.u32 %v4797_v57, %v3344_v58  ;;  %v3312_v5 = vld [vmem:[#allocation2 + $0x98] sm:$0xf0]  ;;  %v3264_v7 = vld [vmem:[#allocation2 + $0x40] sm:$0xf0]  ;;  %v4959_v40 = vld [vmem:[#allocation4 + $0x254] sm:$0xf0] }
  0x57   :  { %902 = vmatpush.bf16.msra.mxu0 %v3339_v23  ;;  %v3267_v11 = vor.u32 %v4777_v6, %v3264_v7  ;;  %v4778_v12 = vld [vmem:[#allocation2 + $0x24] sm:$0xf]  ;;  %v4432_v41 = vld [vmem:[#allocation4 + $0x5d0] sm:$0xf]  ;;  %v5067_v57 = vld [vmem:[#allocation4 + $0x5b4] sm:$0xf0] }
  0x58   :  { %917 = vmatpush.bf16.msrb.mxu1 %v3579_v15  ;;  %879 = vmatmul.bf16.vlgmr.msrb.gmra.mxu2 %v5355_v53  ;;  %v4883_v15 = vld [vmem:[#allocation2 + $0x364] sm:$0xf0]  ;;  %v4384_v7 = vld [vmem:[#allocation4 + $0x570] sm:$0xf] }
  0x59   :  { %925 = vmatpush.bf16.msrb.mxu3 %v3463_v18  ;;  %975 = vmatpush.bf16.msra.mxu2 %v3551_v24  ;;  %v4803_v18 = vld [vmem:[#allocation2 + $0xe4] sm:$0xf0]  ;;  %v3671_v23 = vor.u32 %v4883_v15, %v3670_v14  ;;  %v4838_v24 = vld [vmem:[#allocation2 + $0x204] sm:$0xf]  ;;  %v4868_v15 = vld [vmem:[#allocation2 + $0x2f4] sm:$0xf] }
  0x5a   :  { %v3351_v27 = vor.u32 %v4803_v18, %v3350_v17  ;;  %v3515_v32 = vor.u32 %v4838_v24, %v3512_v25  ;;  %v3856_v25 = vld [vmem:[#allocation4 + $0x150] sm:$0xf] }
  0x5b   :  { %903 = vmatpush.bf16.msra.mxu0 %v3299_v35  ;;  %v3631_v35 = vor.u32 %v4873_v29, %v3630_v28  ;;  %v4971_v29 = vld [vmem:[#allocation4 + $0x2b4] sm:$0xf0] }
  0x5c   :  { %941 = vmatpush.bf16.msra.mxu1 %v3663_v22  ;;  %v4827_v22 = vld [vmem:[#allocation2 + $0x1ac] sm:$0xf] }
  0x5d   :  { %926 = vmatpush.bf16.msrb.mxu3 %v3423_v31  ;;  %976 = vmatpush.bf16.msra.mxu2 %v3511_v36  ;;  %v4793_v31 = vld [vmem:[#allocation2 + $0x94] sm:$0xf0]  ;;  %v3467_v33 = vor.u32 %v4827_v22, %v3464_v26  ;;  %v4828_v36 = vld [vmem:[#allocation2 + $0x1b4] sm:$0xf]  ;;  %v4048_v22 = vld [vmem:[#allocation4 + $0x2d0] sm:$0xf] }
  0x5e   :  { %v3311_v39 = vor.u32 %v4793_v31, %v3310_v30  ;;  %v3475_v44 = vor.u32 %v4828_v36, %v3472_v37  ;;  %v4929_v26 = vld [vmem:[#allocation4 + $0x164] sm:$0xf0]  ;;  %v3808_v36 = vld [vmem:[#allocation4 + $0xf0] sm:$0xf] }
  0x5f   :  { %904 = vmatpush.bf16.msra.mxu0 %v3259_v49  ;;  %v4807_v49 = vld [vmem:[#allocation2 + $0x10c] sm:$0xf]  ;;  %v3857_v28 = vor.u32 %v4929_v26, %v3856_v25  ;;  %v4917_v37 = vld [vmem:[#allocation4 + $0x104] sm:$0xf0]  ;;  %v3880_v26 = vld [vmem:[#allocation4 + $0x180] sm:$0xf] }
  0x60   :  { %942 = vmatpush.bf16.msra.mxu1 %v3623_v34  ;;  %v4817_v34 = vld [vmem:[#allocation2 + $0x15c] sm:$0xf] }
  0x61   :  { %927 = vmatpush.bf16.msrb.mxu3 %v3383_v43  ;;  %977 = vmatpush.bf16.msra.mxu2 %v3471_v50  ;;  %v4783_v43 = vld [vmem:[#allocation2 + $0x44] sm:$0xf0]  ;;  %v3427_v45 = vor.u32 %v4817_v34, %v3424_v38  ;;  %v3384_v50 = vld [vmem:[#allocation2 + $0x130] sm:$0xf0]  ;;  %v4000_v34 = vld [vmem:[#allocation4 + $0x270] sm:$0xf] }
  0x62   :  { %905 = vmatmul.bf16.vlgmr.msra.gmra.mxu0 %v5355_v53  ;;  %v3387_v55 = vor.u32 %v4807_v49, %v3384_v50  ;;  %v3976_v38 = vld [vmem:[#allocation4 + $0x240] sm:$0xf]  ;;  %v3952_v50 = vld [vmem:[#allocation4 + $0x210] sm:$0xf] }
  0x63   :  { %967 = vmatpush.bf16.msrb.mxu0 %v3667_v51  ;;  %3681 = vmatmul.msk.bf16.vlgmr.msrb.gmra.mxu1 %vm763_vm0, %v5348_v63  ;;  %v3271_v51 = vor.u32 %v4783_v43, %v3270_v42  ;;  %v5073_v42 = vld [vmem:[#allocation4 + $0x5e4] sm:$0xf0]  ;;  %v3977_v43 = vor.u32 %v4959_v40, %v3976_v38  ;;  %v3688_v40 = vld [vmem:[#allocation4] sm:$0xf] }
  0x64   :  { %943 = vmatpush.bf16.msra.mxu1 %v3583_v48  ;;  %v3432_v48 = vld [vmem:[#allocation2 + $0x188] sm:$0xf0] }
  0x65   :  { %928 = vmatpush.bf16.msrb.mxu3 %v3343_v56  ;;  %978 = vmatpush.bf16.msra.mxu2 %v3431_v62  ;;  %v3435_v52 = vor.u32 %v4818_v47, %v3432_v48  ;;  %v4808_v56 = vld [vmem:[#allocation2 + $0x114] sm:$0xf]  ;;  %v3352_v62 = vld [vmem:[#allocation2 + $0xe8] sm:$0xf0]  ;;  %v3784_v47 = vld [vmem:[#allocation4 + $0xc0] sm:$0xf] }
  0x66   :  { %v3395_v59 = vor.u32 %v4808_v56, %v3392_v54  ;;  %v3355_v2 = vor.u32 %v4798_v61, %v3352_v62  ;;  %v4911_v48 = vld [vmem:[#allocation4 + $0xd4] sm:$0xf0]  ;;  %v5025_v56 = vld [vmem:[#allocation4 + $0x464] sm:$0xf0]  ;;  %v4408_v54 = vld [vmem:[#allocation4 + $0x5a0] sm:$0xf] }
  0x67   :  { %968 = vmatpush.bf16.msrb.mxu0 %v3627_v1  ;;  %v3304_v1 = vld [vmem:[#allocation2 + $0x90] sm:$0xf0]  ;;  %v3785_v49 = vor.u32 %v4911_v48, %v3784_v47  ;;  %v4905_v61 = vld [vmem:[#allocation4 + $0xa4] sm:$0xf0]  ;;  %v3928_v62 = vld [vmem:[#allocation4 + $0x1e0] sm:$0xf] }
  0x68   :  { %949 = vmatpush.bf16.msrb.mxu1 %v3547_v8  ;;  %v3307_v3 = vor.u32 %v4787_v0, %v3304_v1  ;;  %v4878_v8 = vld [vmem:[#allocation2 + $0x344] sm:$0xf]  ;;  %v4947_v1 = vld [vmem:[#allocation4 + $0x1f4] sm:$0xf0] }
  0x69   :  { %929 = vmatpush.bf16.msrb.mxu3 %v3303_v4  ;;  %979 = vmatpush.bf16.msra.mxu2 %v3391_v13  ;;  %v4788_v4 = vld [vmem:[#allocation2 + $0x74] sm:$0xf]  ;;  %v3272_v13 = vld [vmem:[#allocation2 + $0x48] sm:$0xf0]  ;;  %v3675_v14 = vor.u32 %v4878_v8, %v3672_v9  ;;  %v5061_v8 = vld [vmem:[#allocation4 + $0x584] sm:$0xf0] }
  0x6a   :  { %v3315_v10 = vor.u32 %v4788_v4, %v3312_v5  ;;  %v3275_v17 = vor.u32 %v4778_v12, %v3272_v13  ;;  %v3929_v5 = vor.u32 %v4947_v1, %v3928_v62  ;;  %v4385_v9 = vor.u32 %v5061_v8, %v4384_v7  ;;  %v4899_v12 = vld [vmem:[#allocation4 + $0x74] sm:$0xf0]  ;;  %v5037_v1 = vld [vmem:[#allocation4 + $0x4c4] sm:$0xf0]  ;;  %v3810_v8 = vld [vmem:[#allocation4 + $0x108] sm:$0xf0] }
  0x6b   :  { %969 = vmatpush.bf16.msrb.mxu0 %v3587_v16  ;;  %v3632_v16 = vld [vmem:[#allocation2 + $0x318] sm:$0xf0] }
  0x6c   :  { %950 = vmatpush.bf16.msrb.mxu1 %v3507_v21  ;;  %v3635_v18 = vor.u32 %v4868_v15, %v3632_v16  ;;  %v4941_v15 = vld [vmem:[#allocation4 + $0x1c4] sm:$0xf0]  ;;  %v4192_v16 = vld [vmem:[#allocation4 + $0x3f0] sm:$0xf] }
  0x6d   :  { %930 = vmatpush.bf16.msrb.mxu3 %v3263_v19  ;;  %980 = vmatpush.bf16.msra.mxu2 %v3351_v27  ;;  %v4858_v19 = vld [vmem:[#allocation2 + $0x2a4] sm:$0xf]  ;;  %v4024_v27 = vld [vmem:[#allocation4 + $0x2a0] sm:$0xf] }
  0x6e   :  { %v4025_v30 = vor.u32 %v4971_v29, %v4024_v27  ;;  %v4935_v27 = vld [vmem:[#allocation4 + $0x194] sm:$0xf0] }
  0x6f   :  { %1001 = vmatpush.bf16.msra.mxu0 %v3555_v20  ;;  %v3592_v20 = vld [vmem:[#allocation2 + $0x2c8] sm:$0xf0] }
  0x70   :  { %931 = vmatmul.bf16.vlgmr.msrb.gmra.mxu3 %v5355_v53  ;;  %951 = vmatpush.bf16.msrb.mxu1 %v3467_v33  ;;  %v3595_v21 = vor.u32 %v4858_v19, %v3592_v20  ;;  %v4360_v19 = vld [vmem:[#allocation4 + $0x540] sm:$0xf]  ;;  %v5055_v20 = vld [vmem:[#allocation4 + $0x554] sm:$0xf0] }
  0x71   :  { %993 = vmatpush.bf16.msra.mxu3 %v3671_v23  ;;  %981 = vmatpush.bf16.msra.mxu2 %v3311_v39  ;;  %v4977_v23 = vld [vmem:[#allocation4 + $0x2e4] sm:$0xf0]  ;;  %v3809_v39 = vor.u32 %v4917_v37, %v3808_v36  ;;  %v4926_v36 = vld [vmem:[#allocation4 + $0x154] sm:$0xf]  ;;  %v3858_v37 = vld [vmem:[#allocation4 + $0x168] sm:$0xf0] }
  0x72   :  { %3683 = vmatmul.msk.bf16.vlgmr.msrb.gmra.mxu0 %vm763_vm0, %v5348_v63  ;;  %v4049_v24 = vor.u32 %v4977_v23, %v4048_v22  ;;  %v4361_v22 = vor.u32 %v5055_v20, %v4360_v19  ;;  %v3712_v23 = vld [vmem:[#allocation4 + $0x30] sm:$0xf]  ;;  %v5109_v19 = vld [vmem:[#allocation4 + $0x704] sm:$0xf0] }
  0x73   :  { %1002 = vmatpush.bf16.msra.mxu0 %v3515_v32  ;;  %3682 = vmatmul.msk.bf16.vlgmr.msra.gmra.mxu1 %vm763_vm0, %v5348_v63  ;;  %v3832_v32 = vld [vmem:[#allocation4 + $0x120] sm:$0xf] }
  0x74   :  { %952 = vmatpush.bf16.msrb.mxu1 %v3427_v45 }
  0x75   :  { %994 = vmatpush.bf16.msra.mxu3 %v3631_v35  ;;  %982 = vmatpush.bf16.msra.mxu2 %v3271_v51  ;;  %v4965_v35 = vld [vmem:[#allocation4 + $0x284] sm:$0xf0] }
  0x76   :  { %v4953_v51 = vld [vmem:[#allocation4 + $0x224] sm:$0xf0] }
  0x77   :  { %1003 = vmatpush.bf16.msra.mxu0 %v3475_v44  ;;  %v4433_v44 = vor.u32 %v5073_v42, %v4432_v41  ;;  %v4887_v41 = vld [vmem:[#allocation4 + $0x14] sm:$0xf0] }
  0x78   :  { %953 = vmatpush.bf16.msrb.mxu1 %v3387_v55  ;;  %983 = vmatmul.bf16.vlgmr.msra.gmra.mxu2 %v5355_v53  ;;  %v3953_v55 = vor.u32 %v4953_v51, %v3952_v50  ;;  %v3689_v42 = vor.u32 %v4887_v41, %v3688_v40  ;;  %v4624_v50 = vld [vmem:[#allocation4 + $0x750] sm:$0xf]  ;;  %v5121_v51 = vld [vmem:[#allocation4 + $0x764] sm:$0xf0]  ;;  %v4218_v41 = vld [vmem:[#allocation4 + $0x438] sm:$0xf0] }
  0x79   :  { %995 = vmatpush.bf16.msra.mxu3 %v3591_v46  ;;  %2512 = vmatpush.bf16.msrb.mxu2 %v4049_v24  ;;  %v4893_v24 = vld [vmem:[#allocation4 + $0x44] sm:$0xf0] }
  0x7a   :  { %v3713_v25 = vor.u32 %v4893_v24, %v3712_v23  ;;  %v3786_v23 = vld [vmem:[#allocation4 + $0xd8] sm:$0xf0]  ;;  %v5022_v24 = vld [vmem:[#allocation4 + $0x454] sm:$0xf] }
  0x7b   :  { %1004 = vmatpush.bf16.msra.mxu0 %v3435_v52  ;;  %v4240_v52 = vld [vmem:[#allocation4 + $0x450] sm:$0xf] }
  0x7c   :  { %954 = vmatpush.bf16.msrb.mxu1 %v3347_v60  ;;  %v4241_v58 = vor.u32 %v5025_v56, %v4240_v52  ;;  %v3760_v60 = vld [vmem:[#allocation4 + $0x90] sm:$0xf]  ;;  %v4625_v56 = vor.u32 %v5121_v51, %v4624_v50  ;;  %v3738_v50 = vld [vmem:[#allocation4 + $0x78] sm:$0xf0]  ;;  %v4968_v51 = vld [vmem:[#allocation4 + $0x2a4] sm:$0xf] }
  0x7d   :  { %2499 = vmatpush.bf16.msrb.mxu3 %v3857_v28  ;;  %2513 = vmatpush.bf16.msrb.mxu2 %v4025_v30  ;;  %v3761_v0 = vor.u32 %v4905_v61, %v3760_v60  ;;  %v4168_v28 = vld [vmem:[#allocation4 + $0x3c0] sm:$0xf]  ;;  %v3881_v30 = vor.u32 %v4935_v27, %v3880_v26  ;;  %v4995_v60 = vld [vmem:[#allocation4 + $0x374] sm:$0xf0]  ;;  %v4242_v26 = vld [vmem:[#allocation4 + $0x468] sm:$0xf0] }
  0x7e   :  { %v4245_v27 = vor.u32 %v5022_v24, %v4242_v26 }
  0x7f   :  { %1005 = vmatpush.bf16.msra.mxu0 %v3395_v59  ;;  %v4409_v59 = vor.u32 %v5067_v57, %v4408_v54  ;;  %v4920_v54 = vld [vmem:[#allocation4 + $0x124] sm:$0xf]  ;;  %v3834_v57 = vld [vmem:[#allocation4 + $0x138] sm:$0xf0] }
  0x80   :  { %3684 = vmatmul.msk.bf16.vlgmr.msra.gmra.mxu3 %vm763_vm0, %v5348_v63  ;;  %955 = vmatpush.bf16.msrb.mxu1 %v3307_v3  ;;  %v5019_v3 = vld [vmem:[#allocation4 + $0x434] sm:$0xf0] }
  0x83   :  { %1006 = vmatpush.bf16.msra.mxu0 %v3355_v2  ;;  %v4216_v2 = vld [vmem:[#allocation4 + $0x420] sm:$0xf] }
  0x84   :  { %956 = vmatpush.bf16.msrb.mxu1 %v3267_v11  ;;  %v4217_v6 = vor.u32 %v5019_v3, %v4216_v2  ;;  %v3736_v11 = vld [vmem:[#allocation4 + $0x60] sm:$0xf] }
  0x85   :  { %v3737_v13 = vor.u32 %v4899_v12, %v3736_v11  ;;  %v4096_v11 = vld [vmem:[#allocation4 + $0x330] sm:$0xf]  ;;  %v4989_v12 = vld [vmem:[#allocation4 + $0x344] sm:$0xf0] }
  0x87   :  { %1007 = vmatpush.bf16.msra.mxu0 %v3315_v10  ;;  %957 = vmatmul.bf16.vlgmr.msrb.gmra.mxu1 %v5355_v53 }
  0x88   :  { %1019 = vmatpush.bf16.msra.mxu1 %v3675_v14  ;;  %v3904_v14 = vld [vmem:[#allocation4 + $0x1b0] sm:$0xf] }
  0x8b   :  { %1008 = vmatpush.bf16.msra.mxu0 %v3275_v17  ;;  %v3905_v17 = vor.u32 %v4941_v15, %v3904_v14 }
  0x8c   :  { %1020 = vmatpush.bf16.msra.mxu1 %v3635_v18  ;;  %v5013_v18 = vld [vmem:[#allocation4 + $0x404] sm:$0xf0] }
  0x8e   :  { %1009 = vmatmul.bf16.vlgmr.msra.gmra.mxu0 %v5355_v53  ;;  %v4923_v53 = vld [vmem:[#allocation4 + $0x134] sm:$0xf0] }
  0x8f   :  { %v3833_v33 = vor.u32 %v4923_v53, %v3832_v32  ;;  %2538 = vmatpush.bf16.msrb.mxu0 %v4433_v44  ;;  %v5007_v32 = vld [vmem:[#allocation4 + $0x3d4] sm:$0xf0]  ;;  %v4336_v53 = vld [vmem:[#allocation4 + $0x510] sm:$0xf]  ;;  %v5001_v44 = vld [vmem:[#allocation4 + $0x3a4] sm:$0xf0] }
  0x90   :  { %1021 = vmatpush.bf16.msra.mxu1 %v3595_v21  ;;  %v4193_v21 = vor.u32 %v5013_v18, %v4192_v16  ;;  %v4097_v16 = vor.u32 %v4989_v12, %v4096_v11  ;;  %v4576_v18 = vld [vmem:[#allocation4 + $0x6f0] sm:$0xf]  ;;  %v5085_v12 = vld [vmem:[#allocation4 + $0x644] sm:$0xf0] }
  0x91   :  { %2500 = vmatpush.bf16.msrb.mxu3 %v3833_v33  ;;  %v5049_v33 = vld [vmem:[#allocation4 + $0x524] sm:$0xf0]  ;;  %v4480_v11 = vld [vmem:[#allocation4 + $0x630] sm:$0xf] }
  0x93   :  { %2539 = vmatpush.bf16.msrb.mxu0 %v4409_v59  ;;  %v4120_v59 = vld [vmem:[#allocation4 + $0x360] sm:$0xf] }
  0x94   :  { %2525 = vmatpush.bf16.msrb.mxu1 %v4241_v58  ;;  %v3837_v58 = vor.u32 %v4920_v54, %v3834_v57  ;;  %v4121_v62 = vor.u32 %v4995_v60, %v4120_v59  ;;  %v4026_v54 = vld [vmem:[#allocation4 + $0x2b8] sm:$0xf0]  ;;  %v5010_v57 = vld [vmem:[#allocation4 + $0x3f4] sm:$0xf] }
  0x95   :  { %2501 = vmatpush.bf16.msrb.mxu3 %v3809_v39  ;;  %v3861_v39 = vor.u32 %v4926_v36, %v3858_v37  ;;  %v4974_v37 = vld [vmem:[#allocation4 + $0x2d4] sm:$0xf]  ;;  %v4029_v59 = vor.u32 %v4968_v51, %v4026_v54 }
  0x96   :  { %v4938_v54 = vld [vmem:[#allocation4 + $0x1b4] sm:$0xf] }
  0x97   :  { %3685 = vmatmul.msk.bf16.vlgmr.msra.gmra.mxu1 %vm763_vm0, %v5348_v63  ;;  %v4001_v63 = vor.u32 %v4965_v35, %v4000_v34  ;;  %2540 = vmatpush.bf16.msrb.mxu0 %v4385_v9  ;;  %v4169_v35 = vor.u32 %v5007_v32, %v4168_v28  ;;  %v4072_v28 = vld [vmem:[#allocation4 + $0x300] sm:$0xf] }
  0x98   :  { %2526 = vmatpush.bf16.msrb.mxu1 %v4217_v6  ;;  %v4914_v6 = vld [vmem:[#allocation4 + $0xf4] sm:$0xf] }
  0x99   :  { %2514 = vmatpush.bf16.msrb.mxu2 %v4001_v63  ;;  %2502 = vmatpush.bf16.msrb.mxu3 %v3785_v49  ;;  %v4337_v63 = vor.u32 %v5049_v33, %v4336_v53  ;;  %v5043_v49 = vld [vmem:[#allocation4 + $0x4f4] sm:$0xf0]  ;;  %v3813_v9 = vor.u32 %v4914_v6, %v3810_v8  ;;  %v4902_v33 = vld [vmem:[#allocation4 + $0x94] sm:$0xf]  ;;  %v5004_v6 = vld [vmem:[#allocation4 + $0x3c4] sm:$0xf] }
  0x9a   :  { %v5103_v53 = vld [vmem:[#allocation4 + $0x6d4] sm:$0xf0] }
  0x9b   :  { %2541 = vmatpush.bf16.msrb.mxu0 %v4361_v22  ;;  %v4908_v22 = vld [vmem:[#allocation4 + $0xc4] sm:$0xf] }
  0x9c   :  { %2527 = vmatpush.bf16.msrb.mxu1 %v4193_v21  ;;  %v4577_v21 = vor.u32 %v5109_v19, %v4576_v18  ;;  %v4956_v18 = vld [vmem:[#allocation4 + $0x244] sm:$0xf] }
  0x9d   :  { %2515 = vmatpush.bf16.msrb.mxu2 %v3977_v43  ;;  %2503 = vmatpush.bf16.msrb.mxu3 %v3761_v0  ;;  %v4144_v43 = vld [vmem:[#allocation4 + $0x390] sm:$0xf] }
  0x9e   :  { %v4145_v48 = vor.u32 %v5001_v44, %v4144_v43  ;;  %v4288_v0 = vld [vmem:[#allocation4 + $0x4b0] sm:$0xf]  ;;  %v5097_v44 = vld [vmem:[#allocation4 + $0x6a4] sm:$0xf0] }
  0x9f   :  { %2542 = vmatpush.bf16.msrb.mxu0 %v4337_v63  ;;  %v4289_v3 = vor.u32 %v5037_v1, %v4288_v0  ;;  %v4528_v43 = vld [vmem:[#allocation4 + $0x690] sm:$0xf]  ;;  %v4890_v1 = vld [vmem:[#allocation4 + $0x34] sm:$0xf] }
  0xa0   :  { %2528 = vmatpush.bf16.msrb.mxu1 %v4169_v35  ;;  %v3762_v35 = vld [vmem:[#allocation4 + $0xa8] sm:$0xf0] }
  0xa1   :  { %2516 = vmatpush.bf16.msrb.mxu2 %v3953_v55  ;;  %2504 = vmatpush.bf16.msrb.mxu3 %v3737_v13  ;;  %v4264_v13 = vld [vmem:[#allocation4 + $0x480] sm:$0xf]  ;;  %v3765_v36 = vor.u32 %v4902_v33, %v3762_v35 }
  0xa3   :  { %v5383_v31 = vpop.f32.mrf.mxu1 }
  0xa4   :  { %2529 = vmatpush.bf16.msrb.mxu1 %v4145_v48  ;;  %v4529_v48 = vor.u32 %v5097_v44, %v4528_v43 }
  0xa5   :  { %2517 = vmatpush.bf16.msrb.mxu2 %v3929_v5  ;;  %2505 = vmatpush.bf16.msrb.mxu3 %v3713_v25  ;;  %v5115_v5 = vld [vmem:[#allocation4 + $0x734] sm:$0xf0]  ;;  %v3789_v25 = vor.u32 %v4908_v22, %v3786_v23  ;;  %v4998_v22 = vld [vmem:[#allocation4 + $0x394] sm:$0xf]  ;;  %v4146_v23 = vld [vmem:[#allocation4 + $0x3a8] sm:$0xf0] }
  0xa6   :  { %v4149_v26 = vor.u32 %v4998_v22, %v4146_v23  ;;  %v4362_v22 = vld [vmem:[#allocation4 + $0x558] sm:$0xf0] }
  0xa8   :  { %2530 = vmatpush.bf16.msrb.mxu1 %v4121_v62  ;;  %v5091_v62 = vld [vmem:[#allocation4 + $0x674] sm:$0xf0] }
  0xa9   :  { %v5385_v45 = vpop.f32.mrf.mxu3  ;;  %2518 = vmatpush.bf16.msrb.mxu2 %v3905_v17  ;;  %2506 = vmatpush.bf16.msrb.mxu3 %v3689_v42  ;;  %v5031_v17 = vld [vmem:[#allocation4 + $0x494] sm:$0xf0] }
  0xaa   :  { %v4265_v20 = vor.u32 %v5031_v17, %v4264_v13  ;;  %v3690_v17 = vld [vmem:[#allocation4 + $0x18] sm:$0xf0] }
  0xab   :  { %v791_v46 = vpop.f32.mrf.mxu1 }
  0xac   :  { %v4312_v46 = vld [vmem:[#allocation4 + $0x4e0] sm:$0xf]  ;;  %2531 = vmatpush.bf16.msrb.mxu1 %v4097_v16  ;;  %v4884_v16 = vld [vmem:[#allocation4 + $0x4] sm:$0xf] }
  0xad   :  { %2519 = vmatpush.bf16.msrb.mxu2 %v3881_v30  ;;  %v4313_v55 = vor.u32 %v5043_v49, %v4312_v46  ;;  %2551 = vmatpush.bf16.msra.mxu3 %v4625_v56  ;;  %v4552_v30 = vld [vmem:[#allocation4 + $0x6c0] sm:$0xf]  ;;  %v4896_v49 = vld [vmem:[#allocation4 + $0x64] sm:$0xf] }
  0xae   :  { %v4553_v63 = vor.u32 %v5103_v53, %v4552_v30  ;;  %v3741_v56 = vor.u32 %v4896_v49, %v3738_v50  ;;  %v4950_v30 = vld [vmem:[#allocation4 + $0x214] sm:$0xf]  ;;  %v4992_v53 = vld [vmem:[#allocation4 + $0x364] sm:$0xf] }
  0xaf   :  { %2543 = vmatpush.bf16.msrb.mxu0 %v4313_v55 }
  0xb1   :  { %v817_v4 = vpop.f32.mrf.mxu3  ;;  %2564 = vmatpush.bf16.msra.mxu2 %v3861_v39  ;;  %v5016_v39 = vld [vmem:[#allocation4 + $0x424] sm:$0xf] }
  0xb2   :  { %v4600_v4 = vld [vmem:[#allocation4 + $0x720] sm:$0xf]  ;;  %v4221_v42 = vor.u32 %v5016_v39, %v4218_v41  ;;  %v4944_v39 = vld [vmem:[#allocation4 + $0x1e4] sm:$0xf] }
  0xb3   :  { %v5387_v10 = vpop.f32.mrf.mxu0  ;;  %v4601_v7 = vor.u32 %v5115_v5, %v4600_v4  ;;  %2544 = vmatpush.bf16.msrb.mxu0 %v4289_v3  ;;  %v4962_v3 = vld [vmem:[#allocation4 + $0x274] sm:$0xf]  ;;  %v4002_v5 = vld [vmem:[#allocation4 + $0x288] sm:$0xf0] }
  0xb4   :  { %v4005_v8 = vor.u32 %v4962_v3, %v4002_v5  ;;  %v790_v41 = vadd.f32 %v5383_v31, %v5387_v10  ;;  %v4980_v31 = vld [vmem:[#allocation4 + $0x304] sm:$0xf]  ;;  %v4074_v10 = vld [vmem:[#allocation4 + $0x318] sm:$0xf0] }
  0xb5   :  { %2565 = vmatpush.bf16.msra.mxu2 %v3837_v58  ;;  %2552 = vmatpush.bf16.msra.mxu3 %v4601_v7  ;;  %v4194_v58 = vld [vmem:[#allocation4 + $0x408] sm:$0xf0]  ;;  %v4170_v7 = vld [vmem:[#allocation4 + $0x3d8] sm:$0xf0]  ;;  %v5064_v3 = vld [vmem:[#allocation4 + $0x5a4] sm:$0xf] }
  0xb6   :  { %v4197_v60 = vor.u32 %v5010_v57, %v4194_v58  ;;  %v3906_v57 = vld [vmem:[#allocation4 + $0x1c8] sm:$0xf0]  ;;  %v4410_v5 = vld [vmem:[#allocation4 + $0x5b8] sm:$0xf0] }
  0xb7   :  { %2545 = vmatpush.bf16.msrb.mxu0 %v4265_v20  ;;  %v3693_v20 = vor.u32 %v4884_v16, %v3690_v17 }
  0xb9   :  { %v841_v29 = vpop.f32.mrf.mxu3  ;;  %2566 = vmatpush.bf16.msra.mxu2 %v3813_v9  ;;  %2553 = vmatpush.bf16.msra.mxu3 %v4577_v21  ;;  %v4173_v9 = vor.u32 %v5004_v6, %v4170_v7  ;;  %v3978_v21 = vld [vmem:[#allocation4 + $0x258] sm:$0xf0]  ;;  %v4932_v6 = vld [vmem:[#allocation4 + $0x184] sm:$0xf] }
  0xba   :  { %v3882_v7 = vld [vmem:[#allocation4 + $0x198] sm:$0xf0] }
  0xbb   :  { %v5389_v34 = vpop.f32.mrf.mxu2  ;;  %v778_v38 = vpop.f32.mrf.mxu0  ;;  %2590 = vmatpush.bf16.msra.mxu0 %v4245_v27  ;;  %v4456_v27 = vld [vmem:[#allocation4 + $0x600] sm:$0xf] }
  0xbc   :  { %v4050_v38 = vld [vmem:[#allocation4 + $0x2e8] sm:$0xf0] }
  0xbd   :  { %2567 = vmatpush.bf16.msra.mxu2 %v3789_v25  ;;  %v4053_v40 = vor.u32 %v4974_v37, %v4050_v38  ;;  %2554 = vmatpush.bf16.msra.mxu3 %v4553_v63  ;;  %v3981_v25 = vor.u32 %v4956_v18, %v3978_v21  ;;  %v4122_v63 = vld [vmem:[#allocation4 + $0x378] sm:$0xf0]  ;;  %v816_v18 = vadd.f32 %v5385_v45, %v5389_v34  ;;  %v5052_v21 = vld [vmem:[#allocation4 + $0x544] sm:$0xf] }
  0xbe   :  { %v4125_v37 = vor.u32 %v4992_v53, %v4122_v63  ;;  %v5112_v45 = vld [vmem:[#allocation4 + $0x724] sm:$0xf] }
  0xbf   :  { %2591 = vmatpush.bf16.msra.mxu0 %v4221_v42 }
  0xc0   :  { %v828_v47 = vpop.f32.mrf.mxu1 }
  0xc1   :  { %v5391_v52 = vadd.f32 %v841_v29, %v828_v47  ;;  %v843_v61 = vpop.f32.mrf.mxu3  ;;  %v4983_v29 = vld [vmem:[#allocation4 + $0x314] sm:$0xf0]  ;;  %2568 = vmatpush.bf16.msra.mxu2 %v3765_v36  ;;  %2555 = vmatpush.bf16.msra.mxu3 %v4529_v48  ;;  %v5404_v36 = vld [vmem:[%s5494_s2] sm:$0x1f]  ;;  %v4098_v48 = vld [vmem:[#allocation4 + $0x348] sm:$0xf0] }
  0xc2   :  { %v4073_v32 = vor.u32 %v4983_v29, %v4072_v28  ;;  %v4504_v61 = vld [vmem:[#allocation4 + $0x660] sm:$0xf]  ;;  %v5079_v28 = vld [vmem:[#allocation4 + $0x614] sm:$0xf0]  ;;  %v1034_v43 = vperm.slane %v5404_v36, 0 }
  0xc3   :  { %v804_v2 = vpop.f32.mrf.mxu2  ;;  %v5393_v15 = vpop.f32.mrf.mxu0  ;;  %v4505_v0 = vor.u32 %v5091_v62, %v4504_v61  ;;  %2592 = vmatpush.bf16.msra.mxu0 %v4197_v60  ;;  %v4457_v29 = vor.u32 %v5079_v28, %v4456_v27  ;;  %v4434_v60 = vld [vmem:[#allocation4 + $0x5e8] sm:$0xf0]  ;;  %v3909_v61 = vor.u32 %v4938_v54, %v3906_v57  ;;  %v4077_v62 = vor.u32 %v4980_v31, %v4074_v10 }
  0xc4   :  { %2532 = vmatpush.bf16.msrb.mxu1 %v4073_v32  ;;  %v3714_v2 = vld [vmem:[#allocation4 + $0x48] sm:$0xf0]  ;;  %v1037_v54 = vperm.slane %v5404_v36, 3 }
  0xc5   :  { %2569 = vmatpush.bf16.msra.mxu2 %v3741_v56  ;;  %v3717_v4 = vor.u32 %v4890_v1, %v3714_v2  ;;  %2556 = vmatpush.bf16.msra.mxu3 %v4505_v0  ;;  %v3954_v32 = vld [vmem:[#allocation4 + $0x228] sm:$0xf0]  ;;  %v5070_v56 = vld [vmem:[#allocation4 + $0x5d4] sm:$0xf] }
  0xc6   :  { %v3957_v35 = vor.u32 %v4950_v30, %v3954_v32  ;;  %v4437_v2 = vor.u32 %v5070_v56, %v4434_v60  ;;  %v5046_v30 = vld [vmem:[#allocation4 + $0x514] sm:$0xf]  ;;  %v4338_v32 = vld [vmem:[#allocation4 + $0x528] sm:$0xf0]  ;;  %v1036_v60 = vperm.slane %v5404_v36, 2 }
  0xc7   :  { %2593 = vmatpush.bf16.msra.mxu0 %v4173_v9  ;;  %v4413_v9 = vor.u32 %v5064_v3, %v4410_v5  ;;  %v4341_v34 = vor.u32 %v5046_v30, %v4338_v32  ;;  %v4978_v3 = vld [vmem:[#allocation4 + $0x2ec] sm:$0xf0]  ;;  %v5028_v5 = vld [vmem:[#allocation4 + $0x484] sm:$0xf]  ;;  %v3840_v30 = vld [vmem:[#allocation4 + $0x128] sm:$0xf] }
  0xc8   :  { %v830_v14 = vpop.f32.mrf.mxu1  ;;  %2577 = vmatpush.bf16.msra.mxu1 %v4053_v40  ;;  %v3930_v40 = vld [vmem:[#allocation4 + $0x1f8] sm:$0xf0]  ;;  %v4924_v32 = vld [vmem:[#allocation4 + $0x13c] sm:$0xf0] }
  0xc9   :  { %v4481_v14 = vor.u32 %v5085_v12, %v4480_v11  ;;  %2570 = vmatpush.bf16.msra.mxu2 %v3717_v4  ;;  %v3933_v44 = vor.u32 %v4944_v39, %v3930_v40  ;;  %v5058_v12 = vld [vmem:[#allocation4 + $0x574] sm:$0xf]  ;;  %v4602_v39 = vld [vmem:[#allocation4 + $0x738] sm:$0xf0]  ;;  %v5040_v40 = vld [vmem:[#allocation4 + $0x4e4] sm:$0xf] }
  0xcb   :  { %v869_v47 = vpop.f32.mrf.mxu0  ;;  %2557 = vmatpush.bf16.msra.mxu3 %v4481_v14  ;;  %2594 = vmatpush.bf16.msra.mxu0 %v4149_v26  ;;  %v4365_v26 = vor.u32 %v5052_v21, %v4362_v22  ;;  %v4972_v21 = vld [vmem:[#allocation4 + $0x2bc] sm:$0xf0] }
  0xcc   :  { %2578 = vmatpush.bf16.msra.mxu1 %v4029_v59  ;;  %v4986_v47 = vld [vmem:[#allocation4 + $0x334] sm:$0xf] }
  0xcd   :  { %2571 = vmatpush.bf16.msra.mxu2 %v3693_v20  ;;  %v4101_v50 = vor.u32 %v4986_v47, %v4098_v48  ;;  %v1035_v20 = vperm.slane %v5404_v36, 1  ;;  %v4578_v48 = vld [vmem:[#allocation4 + $0x708] sm:$0xf0] }
  0xcf   :  { %2558 = vmatpush.bf16.msra.mxu3 %v4457_v29  ;;  %2595 = vmatpush.bf16.msra.mxu0 %v4125_v37  ;;  %v4626_v29 = vld [vmem:[#allocation4 + $0x768] sm:$0xf0] }
  0xd0   :  { %v5395_v46 = vpop.f32.mrf.mxu1  ;;  %2579 = vmatpush.bf16.msra.mxu1 %v4005_v8  ;;  %v3885_v8 = vor.u32 %v4932_v6, %v3882_v7 }
  0xd3   :  { %v5397_v55 = vpop.f32.mrf.mxu3  ;;  %2596 = vmatpush.bf16.msra.mxu0 %v4101_v50  ;;  %v4290_v50 = vld [vmem:[#allocation4 + $0x4c8] sm:$0xf0] }
  0xd4   :  { %2580 = vmatpush.bf16.msra.mxu1 %v3981_v25  ;;  %v5118_v25 = vld [vmem:[#allocation4 + $0x754] sm:$0xf] }
  0xd5   :  { %v4629_v37 = vor.u32 %v5118_v25, %v4626_v29  ;;  %v4506_v29 = vld [vmem:[#allocation4 + $0x678] sm:$0xf0] }
  0xd7   :  { %2597 = vmatpush.bf16.msra.mxu0 %v4077_v62  ;;  %v5100_v62 = vld [vmem:[#allocation4 + $0x6c4] sm:$0xf] }
  0xd8   :  { %v895_v13 = vpop.f32.mrf.mxu1  ;;  %2581 = vmatpush.bf16.msra.mxu1 %v3957_v35 }
  0xd9   :  { %v4386_v13 = vld [vmem:[#allocation4 + $0x588] sm:$0xf0] }
  0xda   :  { %v4389_v17 = vor.u32 %v5058_v12, %v4386_v13  ;;  %v4530_v13 = vld [vmem:[#allocation4 + $0x6a8] sm:$0xf0] }
  0xdb   :  { %v856_v19 = vpop.f32.mrf.mxu3  ;;  %v5399_v24 = vpop.f32.mrf.mxu2 }
  0xdc   :  { %2582 = vmatpush.bf16.msra.mxu1 %v3933_v44 }
  0xdf   :  { %v906_v33 = vpop.f32.mrf.mxu0 }
  0xe0   :  { %v919_v38 = vpop.f32.mrf.mxu1  ;;  %2583 = vmatpush.bf16.msra.mxu1 %v3909_v61 }
  0xe1   :  { %v920_v42 = vadd.f32 %v919_v38, %v906_v33 }
  0xe3   :  { %v882_v49 = vpop.f32.mrf.mxu2  ;;  %v1027_v51 = vmax.f32 %v790_v41, %v920_v42  ;;  %v4314_v41 = vld [vmem:[#allocation4 + $0x4f8] sm:$0xf0]  ;;  %v4605_v42 = vor.u32 %v5112_v45, %v4602_v39  ;;  %v5082_v45 = vld [vmem:[#allocation4 + $0x634] sm:$0xf]  ;;  %v4482_v39 = vld [vmem:[#allocation4 + $0x648] sm:$0xf0] }
  0xe4   :  { %2584 = vmatpush.bf16.msra.mxu1 %v3885_v8  ;;  %v4317_v44 = vor.u32 %v5040_v40, %v4314_v41  ;;  %v5034_v49 = vld [vmem:[#allocation4 + $0x4b4] sm:$0xf]  ;;  %v3816_v40 = vld [vmem:[#allocation4 + $0xf8] sm:$0xf]  ;;  %v4918_v41 = vld [vmem:[#allocation4 + $0x10c] sm:$0xf0] }
  0xe5   :  { %v1044_v58 = vadd.f32 %v1034_v43, %v1027_v51  ;;  %v5106_v43 = vld [vmem:[#allocation4 + $0x6f4] sm:$0xf]  ;;  %v868_v51 = vadd.f32 %v5393_v15, %v5397_v55  ;;  %v4293_v31 = vor.u32 %v5034_v49, %v4290_v50  ;;  %v4266_v15 = vld [vmem:[#allocation4 + $0x498] sm:$0xf0]  ;;  %v3817_v49 = vor.u32 %v4918_v41, %v3816_v40 }
  0xe6   :  { %v4581_v61 = vor.u32 %v5106_v43, %v4578_v48  ;;  %v4960_v43 = vld [vmem:[#allocation4 + $0x25c] sm:$0xf0]  ;;  %v4485_v48 = vor.u32 %v5082_v45, %v4482_v39  ;;  %v894_v50 = vadd.f32 %v5395_v46, %v5399_v24  ;;  %v3768_v46 = vld [vmem:[#allocation4 + $0x98] sm:$0xf]  ;;  %v4927_v40 = vld [vmem:[#allocation4 + $0x15c] sm:$0xf] }
  0xe7   :  { %v908_v59 = vpop.f32.mrf.mxu0  ;;  %v1049_v0 = vmax.f32 %v1044_v58, 0.0  ;;  %v4248_v24 = vld [vmem:[#allocation4 + $0x458] sm:$0xf]  ;;  %v4936_v45 = vld [vmem:[#allocation4 + $0x19c] sm:$0xf0] }
  0xe8   :  { %v921_v1 = vpop.f32.mrf.mxu1  ;;  %v5056_v39 = vld [vmem:[#allocation4 + $0x55c] sm:$0xf0]  ;;  %v3866_v41 = vld [vmem:[#allocation4 + $0x170] sm:$0xf0] }
  0xe9   :  { %v5409_v4 = vpack.c.bf16 %v1049_v0, %v1049_v0  ;;  %v4554_v0 = vld [vmem:[#allocation4 + $0x6d8] sm:$0xf0]  ;;  %v4056_v1 = vld [vmem:[#allocation4 + $0x2d8] sm:$0xf] }
  0xea   :  { %v4557_v8 = vor.u32 %v5100_v62, %v4554_v0  ;;  %v4057_v12 = vor.u32 %v4978_v3, %v4056_v1  ;;  %v5074_v62 = vld [vmem:[#allocation4 + $0x5ec] sm:$0xf0] }
  0xeb   :  { %2507 = vmatmul.bf16.vlgmr.msrb.gmra.mxu3 %v5409_v4  ;;  %v5026_v3 = vld [vmem:[#allocation4 + $0x46c] sm:$0xf0] }
  0xec   :  { %2603 = vmatpush.bf16.msrb.mxu3 %v4437_v2 }
  0xef   :  { %v971_v14 = vpop.f32.mrf.mxu0 }
  0xf0   :  { %v945_v16 = vpop.f32.mrf.mxu1  ;;  %2604 = vmatpush.bf16.msrb.mxu3 %v4413_v9  ;;  %v5094_v9 = vld [vmem:[#allocation4 + $0x694] sm:$0xf] }
  0xf3   :  { %v932_v11 = vpop.f32.mrf.mxu3 }
  0xf4   :  { %v946_v19 = vadd.f32 %v945_v16, %v932_v11  ;;  %2605 = vmatpush.bf16.msrb.mxu3 %v4389_v17  ;;  %v3864_v16 = vld [vmem:[#allocation4 + $0x158] sm:$0xf] }
  0xf6   :  { %v1028_v23 = vmax.f32 %v816_v18, %v946_v19  ;;  %v4269_v18 = vor.u32 %v5028_v5, %v4266_v15  ;;  %v4906_v15 = vld [vmem:[#allocation4 + $0xac] sm:$0xf0] }
  0xf7   :  { %v973_v53 = vpop.f32.mrf.mxu0 }
  0xf8   :  { %v1045_v27 = vadd.f32 %v1035_v20, %v1028_v23  ;;  %v947_v63 = vpop.f32.mrf.mxu1  ;;  %2606 = vmatpush.bf16.msrb.mxu3 %v4365_v26  ;;  %v4032_v20 = vld [vmem:[#allocation4 + $0x2a8] sm:$0xf]  ;;  %v4533_v23 = vor.u32 %v5094_v9, %v4530_v13  ;;  %v5088_v26 = vld [vmem:[#allocation4 + $0x664] sm:$0xf]  ;;  %v4008_v53 = vld [vmem:[#allocation4 + $0x278] sm:$0xf] }
  0xf9   :  { %v4509_v63 = vor.u32 %v5088_v26, %v4506_v29  ;;  %v5068_v9 = vld [vmem:[#allocation4 + $0x5bc] sm:$0xf0]  ;;  %v5062_v26 = vld [vmem:[#allocation4 + $0x58c] sm:$0xf0]  ;;  %v3720_v29 = vld [vmem:[#allocation4 + $0x38] sm:$0xf] }
  0xfa   :  { %v1050_v33 = vmax.f32 %v1045_v27, 0.0 }
  0xfb   :  { %v934_v28 = vpop.f32.mrf.mxu3  ;;  %v984_v35 = vpop.f32.mrf.mxu2 }
  0xfc   :  { %v5415_v38 = vpack.c.bf16 %v1050_v33, %v1050_v33  ;;  %2607 = vmatpush.bf16.msrb.mxu3 %v4341_v34  ;;  %v4033_v28 = vor.u32 %v4972_v21, %v4032_v20  ;;  %v4966_v33 = vld [vmem:[#allocation4 + $0x28c] sm:$0xf0]  ;;  %v5020_v20 = vld [vmem:[#allocation4 + $0x43c] sm:$0xf0] }
  0xfd   :  { %v4009_v34 = vor.u32 %v4966_v33, %v4008_v53  ;;  %v4894_v53 = vld [vmem:[#allocation4 + $0x4c] sm:$0xf0]  ;;  %v4200_v33 = vld [vmem:[#allocation4 + $0x3f8] sm:$0xf] }
  0xfe   :  { %2520 = vmatmul.bf16.vlgmr.msrb.gmra.mxu2 %v5415_v38 }
  0xff   :  { %2616 = vmatpush.bf16.msrb.mxu2 %v4629_v37  ;;  %v3841_v37 = vor.u32 %v4924_v32, %v3840_v30 }
 0x100   :  { %2608 = vmatpush.bf16.msrb.mxu3 %v4317_v44 }
 0x103   :  { %v997_v47 = vpop.f32.mrf.mxu3  ;;  %v986_v57 = vpop.f32.mrf.mxu2  ;;  %2617 = vmatpush.bf16.msrb.mxu2 %v4605_v42  ;;  %v3984_v42 = vld [vmem:[#allocation4 + $0x248] sm:$0xf] }
 0x104   :  { %v998_v56 = vadd.f32 %v997_v47, %v984_v35  ;;  %v958_v59 = vpop.f32.mrf.mxu1  ;;  %2609 = vmatpush.bf16.msrb.mxu3 %v4293_v31  ;;  %v1038_v47 = vperm.slane %v5404_v36, 4  ;;  %v4458_v57 = vld [vmem:[#allocation4 + $0x618] sm:$0xf0] }
 0x105   :  { %v972_v10 = vadd.f32 %v971_v14, %v958_v59  ;;  %v4930_v14 = vld [vmem:[#allocation4 + $0x16c] sm:$0xf0]  ;;  %v4912_v59 = vld [vmem:[#allocation4 + $0xdc] sm:$0xf0] }
 0x106   :  { %v1030_v58 = vmax.f32 %v868_v51, %v998_v56  ;;  %v3865_v25 = vor.u32 %v4930_v14, %v3864_v16  ;;  %v3985_v56 = vor.u32 %v4960_v43, %v3984_v42  ;;  %v3769_v16 = vor.u32 %v4906_v15, %v3768_v46 }
 0x107   :  { %v1029_v55 = vmax.f32 %v5391_v52, %v972_v10  ;;  %2618 = vmatpush.bf16.msrb.mxu2 %v4581_v61  ;;  %v4954_v61 = vld [vmem:[#allocation4 + $0x22c] sm:$0xf0]  ;;  %v4440_v10 = vld [vmem:[#allocation4 + $0x5d8] sm:$0xf]  ;;  %v3721_v43 = vor.u32 %v4894_v53, %v3720_v29  ;;  %v5032_v29 = vld [vmem:[#allocation4 + $0x49c] sm:$0xf0] }
 0x108   :  { %v1047_v2 = vadd.f32 %v1037_v54, %v1030_v58  ;;  %2610 = vmatpush.bf16.msrb.mxu3 %v4269_v18  ;;  %v5076_v54 = vld [vmem:[#allocation4 + $0x604] sm:$0xf]  ;;  %v3792_v58 = vld [vmem:[#allocation4 + $0xc8] sm:$0xf]  ;;  %v4441_v5 = vor.u32 %v5074_v62, %v4440_v10  ;;  %v4152_v62 = vld [vmem:[#allocation4 + $0x398] sm:$0xf] }
 0x109   :  { %v1046_v11 = vadd.f32 %v1036_v60, %v1029_v55  ;;  %v3960_v60 = vld [vmem:[#allocation4 + $0x218] sm:$0xf]  ;;  %v4461_v36 = vor.u32 %v5076_v54, %v4458_v57  ;;  %v3793_v1 = vor.u32 %v4912_v59, %v3792_v58  ;;  %v3936_v55 = vld [vmem:[#allocation4 + $0x1e8] sm:$0xf]  ;;  %v5050_v57 = vld [vmem:[#allocation4 + $0x52c] sm:$0xf0] }
 0x10a   :  { %v1052_v7 = vmax.f32 %v1047_v2, 0.0  ;;  %v3961_v2 = vor.u32 %v4954_v61, %v3960_v60  ;;  %v4224_v18 = vld [vmem:[#allocation4 + $0x428] sm:$0xf]  ;;  %v4344_v54 = vld [vmem:[#allocation4 + $0x518] sm:$0xf] }
 0x10b   :  { %v1010_v6 = vpop.f32.mrf.mxu0  ;;  %v999_v17 = vpop.f32.mrf.mxu3  ;;  %v1051_v22 = vmax.f32 %v1046_v11, 0.0  ;;  %2619 = vmatpush.bf16.msrb.mxu2 %v4557_v8  ;;  %v4416_v8 = vld [vmem:[#allocation4 + $0x5a8] sm:$0xf]  ;;  %v4632_v58 = vld [vmem:[#allocation4 + $0x758] sm:$0xf] }
 0x10c   :  { %v5423_v19 = vpack.c.bf16 %v1052_v7, %v1052_v7  ;;  %v960_v52 = vpop.f32.mrf.mxu1  ;;  %v3744_v17 = vld [vmem:[#allocation4 + $0x68] sm:$0xf]  ;;  %v4417_v21 = vor.u32 %v5068_v9, %v4416_v8  ;;  %v5122_v59 = vld [vmem:[#allocation4 + $0x76c] sm:$0xf0]  ;;  %v4921_v61 = vld [vmem:[#allocation4 + $0x12c] sm:$0xf] }
 0x10d   :  { %v5426_v27 = vpack.c.bf16 %v1051_v22, %v1051_v22  ;;  %v4900_v22 = vld [vmem:[#allocation4 + $0x7c] sm:$0xf0]  ;;  %v3912_v52 = vld [vmem:[#allocation4 + $0x1b8] sm:$0xf] }
 0x10e   :  { %2546 = vmatmul.bf16.vlgmr.msrb.gmra.mxu0 %v5423_v19  ;;  %2572 = vmatmul.bf16.vlgmr.msra.gmra.mxu2 %v5409_v4  ;;  %v3745_v30 = vor.u32 %v4900_v22, %v3744_v17  ;;  %v4996_v8 = vld [vmem:[#allocation4 + $0x37c] sm:$0xf0]  ;;  %v4584_v17 = vld [vmem:[#allocation4 + $0x6f8] sm:$0xf]  ;;  %v3794_v22 = vld [vmem:[#allocation4 + $0xe0] sm:$0xf0] }
 0x10f   :  { %2642 = vmatpush.bf16.msrb.mxu0 %v4057_v12  ;;  %2533 = vmatmul.bf16.vlgmr.msrb.gmra.mxu1 %v5426_v27  ;;  %v4249_v12 = vor.u32 %v5026_v3, %v4248_v24  ;;  %v5044_v24 = vld [vmem:[#allocation4 + $0x4fc] sm:$0xf0]  ;;  %v4608_v3 = vld [vmem:[#allocation4 + $0x728] sm:$0xf] }
 0x110   :  { %2620 = vmatpush.bf16.msrb.mxu2 %v4533_v23  ;;  %2629 = vmatpush.bf16.msrb.mxu1 %v3865_v25  ;;  %v4942_v23 = vld [vmem:[#allocation4 + $0x1cc] sm:$0xf0]  ;;  %v4392_v25 = vld [vmem:[#allocation4 + $0x578] sm:$0xf]  ;;  %v5104_v53 = vld [vmem:[#allocation4 + $0x6dc] sm:$0xf0] }
 0x111   :  { %v3913_v32 = vor.u32 %v4942_v23, %v3912_v52  ;;  %v4104_v52 = vld [vmem:[#allocation4 + $0x338] sm:$0xf]  ;;  %v4990_v23 = vld [vmem:[#allocation4 + $0x34c] sm:$0xf0] }
 0x113   :  { %v1012_v35 = vpop.f32.mrf.mxu0  ;;  %2643 = vmatpush.bf16.msrb.mxu0 %v4033_v28  ;;  %v4225_v28 = vor.u32 %v5020_v20, %v4224_v18  ;;  %v5110_v18 = vld [vmem:[#allocation4 + $0x70c] sm:$0xf0] }
 0x114   :  { %2621 = vmatpush.bf16.msrb.mxu2 %v4509_v63  ;;  %2630 = vmatpush.bf16.msrb.mxu1 %v3841_v37  ;;  %v1023_v44 = vpop.f32.mrf.mxu1  ;;  %v5014_v35 = vld [vmem:[#allocation4 + $0x40c] sm:$0xf0]  ;;  %v4393_v63 = vor.u32 %v5062_v26, %v4392_v25  ;;  %v3888_v37 = vld [vmem:[#allocation4 + $0x188] sm:$0xf]  ;;  %v4585_v26 = vor.u32 %v5110_v18, %v4584_v17  ;;  %v5119_v17 = vld [vmem:[#allocation4 + $0x75c] sm:$0xf] }
 0x115   :  { %v1024_v51 = vadd.f32 %v1023_v44, %v1010_v6  ;;  %v4948_v6 = vld [vmem:[#allocation4 + $0x1fc] sm:$0xf0]  ;;  %v4201_v42 = vor.u32 %v5014_v35, %v4200_v33  ;;  %v3889_v44 = vor.u32 %v4936_v45, %v3888_v37  ;;  %v4903_v33 = vld [vmem:[#allocation4 + $0x9c] sm:$0xf]  ;;  %v4105_v35 = vor.u32 %v4990_v23, %v4104_v52  ;;  %v4250_v45 = vld [vmem:[#allocation4 + $0x470] sm:$0xf0] }
 0x116   :  { %v3937_v14 = vor.u32 %v4948_v6, %v3936_v55  ;;  %v4915_v55 = vld [vmem:[#allocation4 + $0xfc] sm:$0xf]  ;;  %v3818_v6 = vld [vmem:[#allocation4 + $0x110] sm:$0xf0] }
 0x117   :  { %2644 = vmatpush.bf16.msrb.mxu0 %v4009_v34  ;;  %v1031_v31 = vmax.f32 %v894_v50, %v1024_v51  ;;  %v4368_v34 = vld [vmem:[#allocation4 + $0x548] sm:$0xf]  ;;  %v3869_v50 = vor.u32 %v4927_v40, %v3866_v41  ;;  %v5023_v37 = vld [vmem:[#allocation4 + $0x45c] sm:$0xf]  ;;  %v4634_v18 = vld [vmem:[#allocation4 + $0x770] sm:$0xf0] }
 0x118   :  { %2622 = vmatpush.bf16.msrb.mxu2 %v4485_v48  ;;  %2631 = vmatpush.bf16.msrb.mxu1 %v3817_v49  ;;  %v5008_v48 = vld [vmem:[#allocation4 + $0x3dc] sm:$0xf0]  ;;  %v4369_v49 = vor.u32 %v5056_v39, %v4368_v34  ;;  %v3696_v51 = vld [vmem:[#allocation4 + $0x8] sm:$0xf] }
 0x119   :  { %v1048_v0 = vadd.f32 %v1038_v47, %v1031_v31  ;;  %v4176_v47 = vld [vmem:[#allocation4 + $0x3c8] sm:$0xf]  ;;  %v3842_v31 = vld [vmem:[#allocation4 + $0x140] sm:$0xf0]  ;;  %v4984_v39 = vld [vmem:[#allocation4 + $0x31c] sm:$0xf0] }
 0x11a   :  { %v4177_v60 = vor.u32 %v5008_v48, %v4176_v47  ;;  %v3845_v46 = vor.u32 %v4921_v61, %v3842_v31  ;;  %v4080_v34 = vld [vmem:[#allocation4 + $0x308] sm:$0xf]  ;;  %v4253_v47 = vor.u32 %v5023_v37, %v4250_v45  ;;  %v4536_v48 = vld [vmem:[#allocation4 + $0x698] sm:$0xf]  ;;  %v4034_v61 = vld [vmem:[#allocation4 + $0x2c0] sm:$0xf0] }
 0x11b   :  { %2645 = vmatpush.bf16.msrb.mxu0 %v3985_v56  ;;  %v1053_v7 = vmax.f32 %v1048_v0, 0.0  ;;  %v4888_v56 = vld [vmem:[#allocation4 + $0x1c] sm:$0xf0]  ;;  %v4345_v0 = vor.u32 %v5050_v57, %v4344_v54  ;;  %v5017_v54 = vld [vmem:[#allocation4 + $0x42c] sm:$0xf] }
 0x11c   :  { %2623 = vmatpush.bf16.msrb.mxu2 %v4461_v36  ;;  %v1025_v11 = vpop.f32.mrf.mxu1  ;;  %2632 = vmatpush.bf16.msrb.mxu1 %v3793_v1  ;;  %v3697_v10 = vor.u32 %v4888_v56, %v3696_v51  ;;  %v5002_v36 = vld [vmem:[#allocation4 + $0x3ac] sm:$0xf0]  ;;  %v4633_v1 = vor.u32 %v5122_v59, %v4632_v58  ;;  %v4081_v51 = vor.u32 %v4984_v39, %v4080_v34  ;;  %v3746_v56 = vld [vmem:[#allocation4 + $0x80] sm:$0xf0]  ;;  %v4951_v45 = vld [vmem:[#allocation4 + $0x21c] sm:$0xf] }
 0x11d   :  { %v5434_v13 = vpack.c.bf16 %v1053_v7, %v1053_v7  ;;  %v4153_v15 = vor.u32 %v5002_v36, %v4152_v62  ;;  %v4128_v7 = vld [vmem:[#allocation4 + $0x368] sm:$0xf]  ;;  %v4226_v57 = vld [vmem:[#allocation4 + $0x440] sm:$0xf0]  ;;  %v5092_v36 = vld [vmem:[#allocation4 + $0x67c] sm:$0xf0] }
 0x11e   :  { %2598 = vmatmul.bf16.vlgmr.msra.gmra.mxu0 %v5426_v27  ;;  %v4129_v20 = vor.u32 %v4996_v8, %v4128_v7  ;;  %v4512_v62 = vld [vmem:[#allocation4 + $0x668] sm:$0xf]  ;;  %v4488_v7 = vld [vmem:[#allocation4 + $0x638] sm:$0xf]  ;;  %v5086_v8 = vld [vmem:[#allocation4 + $0x64c] sm:$0xf0] }
 0x11f   :  { %2646 = vmatpush.bf16.msrb.mxu0 %v3961_v2  ;;  %2559 = vmatmul.bf16.vlgmr.msra.gmra.mxu3 %v5434_v13  ;;  %v4320_v2 = vld [vmem:[#allocation4 + $0x4e8] sm:$0xf]  ;;  %v3962_v34 = vld [vmem:[#allocation4 + $0x230] sm:$0xf0] }
 0x120   :  { %2668 = vmatpush.bf16.msra.mxu2 %v4441_v5  ;;  %2585 = vmatmul.bf16.vlgmr.msra.gmra.mxu1 %v5415_v38  ;;  %v5116_v5 = vld [vmem:[#allocation4 + $0x73c] sm:$0xf0]  ;;  %v4321_v9 = vor.u32 %v5044_v24, %v4320_v2  ;;  %v5011_v2 = vld [vmem:[#allocation4 + $0x3fc] sm:$0xf] }
 0x121   :  { %2624 = vmatmul.bf16.vlgmr.msrb.gmra.mxu2 %v5434_v13  ;;  %2655 = vmatpush.bf16.msra.mxu3 %v4249_v12  ;;  %v4609_v11 = vor.u32 %v5116_v5, %v4608_v3  ;;  %v4296_v12 = vld [vmem:[#allocation4 + $0x4b8] sm:$0xf]  ;;  %v4513_v3 = vor.u32 %v5092_v36, %v4512_v62  ;;  %v4963_v5 = vld [vmem:[#allocation4 + $0x27c] sm:$0xf]  ;;  %v5101_v62 = vld [vmem:[#allocation4 + $0x6cc] sm:$0xf] }
 0x122   :  { %2633 = vmatpush.bf16.msrb.mxu1 %v3769_v16  ;;  %v3821_v16 = vor.u32 %v4915_v55, %v3818_v6  ;;  %v4562_v36 = vld [vmem:[#allocation4 + $0x6e0] sm:$0xf0] }
 0x123   :  { %2647 = vmatpush.bf16.msrb.mxu0 %v3937_v14  ;;  %v5038_v14 = vld [vmem:[#allocation4 + $0x4cc] sm:$0xf0] }
 0x124   :  { %2669 = vmatpush.bf16.msra.mxu2 %v4417_v21  ;;  %v4909_v21 = vld [vmem:[#allocation4 + $0xcc] sm:$0xf]  ;;  %v4297_v25 = vor.u32 %v5038_v14, %v4296_v12 }
 0x125   :  { %2656 = vmatpush.bf16.msra.mxu3 %v4225_v28  ;;  %v4272_v28 = vld [vmem:[#allocation4 + $0x488] sm:$0xf]  ;;  %v5005_v12 = vld [vmem:[#allocation4 + $0x3cc] sm:$0xf] }
 0x126   :  { %2634 = vmatpush.bf16.msrb.mxu1 %v3745_v30  ;;  %v3797_v30 = vor.u32 %v4909_v21, %v3794_v22  ;;  %v4273_v40 = vor.u32 %v5032_v29, %v4272_v28  ;;  %v4957_v21 = vld [vmem:[#allocation4 + $0x24c] sm:$0xf]  ;;  %v3986_v22 = vld [vmem:[#allocation4 + $0x260] sm:$0xf0]  ;;  %v4999_v28 = vld [vmem:[#allocation4 + $0x39c] sm:$0xf]  ;;  %v4637_v29 = vor.u32 %v5119_v17, %v4634_v18 }
 0x127   :  { %2648 = vmatpush.bf16.msrb.mxu0 %v3913_v32  ;;  %v4560_v32 = vld [vmem:[#allocation4 + $0x6c8] sm:$0xf]  ;;  %v3872_v18 = vld [vmem:[#allocation4 + $0x160] sm:$0xf] }
 0x128   :  { %2670 = vmatpush.bf16.msra.mxu2 %v4393_v63  ;;  %v3770_v63 = vld [vmem:[#allocation4 + $0xb0] sm:$0xf0]  ;;  %v4561_v41 = vor.u32 %v5104_v53, %v4560_v32  ;;  %v5071_v32 = vld [vmem:[#allocation4 + $0x5dc] sm:$0xf] }
 0x129   :  { %2657 = vmatpush.bf16.msra.mxu3 %v4201_v42  ;;  %v4975_v42 = vld [vmem:[#allocation4 + $0x2dc] sm:$0xf]  ;;  %v4442_v53 = vld [vmem:[#allocation4 + $0x5f0] sm:$0xf0] }
 0x12a   :  { %2635 = vmatpush.bf16.msrb.mxu1 %v3721_v43  ;;  %v4058_v43 = vld [vmem:[#allocation4 + $0x2f0] sm:$0xf0] }
 0x12b   :  { %2649 = vmatpush.bf16.msrb.mxu0 %v3889_v44  ;;  %v3773_v44 = vor.u32 %v4903_v33, %v3770_v63  ;;  %v4061_v58 = vor.u32 %v4975_v42, %v4058_v43  ;;  %v3989_v33 = vor.u32 %v4957_v21, %v3986_v22  ;;  %v4610_v63 = vld [vmem:[#allocation4 + $0x740] sm:$0xf0] }
 0x12c   :  { %2671 = vmatpush.bf16.msra.mxu2 %v4369_v49  ;;  %v5098_v49 = vld [vmem:[#allocation4 + $0x6ac] sm:$0xf0]  ;;  %v4130_v43 = vld [vmem:[#allocation4 + $0x380] sm:$0xf0] }
 0x12d   :  { %2658 = vmatpush.bf16.msra.mxu3 %v4177_v60  ;;  %v4537_v59 = vor.u32 %v5098_v49, %v4536_v48  ;;  %v4969_v60 = vld [vmem:[#allocation4 + $0x2ac] sm:$0xf]  ;;  %v3965_v48 = vor.u32 %v4951_v45, %v3962_v34  ;;  %v5107_v49 = vld [vmem:[#allocation4 + $0x6fc] sm:$0xf]  ;;  %v4322_v34 = vld [vmem:[#allocation4 + $0x500] sm:$0xf0] }
 0x12e   :  { %2650 = vmatmul.bf16.vlgmr.msrb.gmra.mxu0 %v5415_v38  ;;  %2636 = vmatpush.bf16.msrb.mxu1 %v3697_v10  ;;  %v4229_v10 = vor.u32 %v5017_v54, %v4226_v57  ;;  %v4037_v24 = vor.u32 %v4969_v60, %v4034_v61  ;;  %v4106_v60 = vld [vmem:[#allocation4 + $0x350] sm:$0xf0]  ;;  %v5059_v61 = vld [vmem:[#allocation4 + $0x57c] sm:$0xf]  ;;  %v5041_v45 = vld [vmem:[#allocation4 + $0x4ec] sm:$0xf] }
 0x12f   :  { %2694 = vmatpush.bf16.msra.mxu0 %v3869_v50  ;;  %2611 = vmatmul.bf16.vlgmr.msrb.gmra.mxu3 %v5423_v19  ;;  %v4897_v50 = vld [vmem:[#allocation4 + $0x6c] sm:$0xf] }
 0x130   :  { %2672 = vmatpush.bf16.msra.mxu2 %v4345_v0  ;;  %v3749_v31 = vor.u32 %v4897_v50, %v3746_v56  ;;  %v4891_v0 = vld [vmem:[#allocation4 + $0x3c] sm:$0xf]  ;;  %v4586_v50 = vld [vmem:[#allocation4 + $0x710] sm:$0xf0]  ;;  %v3938_v56 = vld [vmem:[#allocation4 + $0x200] sm:$0xf0] }
 0x131   :  { %2637 = vmatmul.bf16.vlgmr.msrb.gmra.mxu1 %v5409_v4  ;;  %2659 = vmatpush.bf16.msra.mxu3 %v4153_v15  ;;  %v4010_v15 = vld [vmem:[#allocation4 + $0x290] sm:$0xf0] }
 0x132   :  { %2681 = vmatpush.bf16.msra.mxu1 %v4633_v1  ;;  %v3722_v1 = vld [vmem:[#allocation4 + $0x50] sm:$0xf0]  ;;  %v4013_v14 = vor.u32 %v4963_v5, %v4010_v15  ;;  %v4565_v5 = vor.u32 %v5101_v62, %v4562_v36  ;;  %v5053_v15 = vld [vmem:[#allocation4 + $0x54c] sm:$0xf]  ;;  %v3800_v62 = vld [vmem:[#allocation4 + $0xd0] sm:$0xf] }
 0x133   :  { %2695 = vmatpush.bf16.msra.mxu0 %v3845_v46  ;;  %v4202_v46 = vld [vmem:[#allocation4 + $0x410] sm:$0xf0]  ;;  %v3725_v55 = vor.u32 %v4891_v0, %v3722_v1  ;;  %v4939_v0 = vld [vmem:[#allocation4 + $0x1bc] sm:$0xf]  ;;  %v4913_v36 = vld [vmem:[#allocation4 + $0xe4] sm:$0xf0] }
 0x134   :  { %2673 = vmatpush.bf16.msra.mxu2 %v4321_v9  ;;  %v4205_v6 = vor.u32 %v5011_v2, %v4202_v46  ;;  %v4885_v9 = vld [vmem:[#allocation4 + $0xc] sm:$0xf]  ;;  %v3914_v1 = vld [vmem:[#allocation4 + $0x1d0] sm:$0xf0] }
 0x135   :  { %2660 = vmatpush.bf16.msra.mxu3 %v4129_v20  ;;  %v4489_v20 = vor.u32 %v5086_v8, %v4488_v7  ;;  %v3917_v7 = vor.u32 %v4939_v0, %v3914_v1  ;;  %v4538_v8 = vld [vmem:[#allocation4 + $0x6b0] sm:$0xf0] }
 0x136   :  { %2682 = vmatpush.bf16.msra.mxu1 %v4609_v11  ;;  %v3698_v11 = vld [vmem:[#allocation4 + $0x20] sm:$0xf0] }
 0x137   :  { %2696 = vmatpush.bf16.msra.mxu0 %v3821_v16  ;;  %v4178_v16 = vld [vmem:[#allocation4 + $0x3e0] sm:$0xf0]  ;;  %v3701_v52 = vor.u32 %v4885_v9, %v3698_v11  ;;  %v4064_v9 = vld [vmem:[#allocation4 + $0x2e0] sm:$0xf]  ;;  %v4979_v11 = vld [vmem:[#allocation4 + $0x2f4] sm:$0xf0] }
 0x138   :  { %2674 = vmatpush.bf16.msra.mxu2 %v4297_v25  ;;  %v4181_v23 = vor.u32 %v5005_v12, %v4178_v16  ;;  %v4464_v25 = vld [vmem:[#allocation4 + $0x608] sm:$0xf]  ;;  %v4933_v12 = vld [vmem:[#allocation4 + $0x18c] sm:$0xf]  ;;  %v3890_v16 = vld [vmem:[#allocation4 + $0x1a0] sm:$0xf0]  ;;  %v4065_v22 = vor.u32 %v4979_v11, %v4064_v9 }
 0x139   :  { %2661 = vmatpush.bf16.msra.mxu3 %v4105_v35  ;;  %v5113_v35 = vld [vmem:[#allocation4 + $0x72c] sm:$0xf]  ;;  %v3776_v11 = vld [vmem:[#allocation4 + $0xa0] sm:$0xf] }
 0x13a   :  { %2683 = vmatpush.bf16.msra.mxu1 %v4585_v26  ;;  %v5080_v26 = vld [vmem:[#allocation4 + $0x61c] sm:$0xf0]  ;;  %v4613_v42 = vor.u32 %v5113_v35, %v4610_v63  ;;  %v4925_v35 = vld [vmem:[#allocation4 + $0x144] sm:$0xf0] }
 0x13b   :  { %2697 = vmatpush.bf16.msra.mxu0 %v3797_v30  ;;  %v4154_v30 = vld [vmem:[#allocation4 + $0x3b0] sm:$0xf0]  ;;  %v4465_v37 = vor.u32 %v5080_v26, %v4464_v25  ;;  %v5089_v25 = vld [vmem:[#allocation4 + $0x66c] sm:$0xf]  ;;  %v3893_v26 = vor.u32 %v4933_v12, %v3890_v16  ;;  %v4907_v12 = vld [vmem:[#allocation4 + $0xb4] sm:$0xf0] }
 0x13c   :  { %2675 = vmatpush.bf16.msra.mxu2 %v4273_v40  ;;  %v4157_v39 = vor.u32 %v4999_v28, %v4154_v30  ;;  %v4445_v40 = vor.u32 %v5071_v32, %v4442_v53  ;;  %v4514_v28 = vld [vmem:[#allocation4 + $0x680] sm:$0xf0]  ;;  %v4973_v30 = vld [vmem:[#allocation4 + $0x2c4] sm:$0xf0] }
 0x13d   :  { %2662 = vmatpush.bf16.msra.mxu3 %v4081_v51  ;;  %v4945_v51 = vld [vmem:[#allocation4 + $0x1ec] sm:$0xf]  ;;  %v4517_v63 = vor.u32 %v5089_v25, %v4514_v28  ;;  %v5063_v25 = vld [vmem:[#allocation4 + $0x594] sm:$0xf0]  ;;  %v4901_v28 = vld [vmem:[#allocation4 + $0x84] sm:$0xf0] }
 0x13e   :  { %2684 = vmatpush.bf16.msra.mxu1 %v4561_v41  ;;  %v4993_v41 = vld [vmem:[#allocation4 + $0x36c] sm:$0xf] }
 0x13f   :  { %2698 = vmatpush.bf16.msra.mxu0 %v3773_v44  ;;  %2676 = vmatmul.bf16.vlgmr.msra.gmra.mxu2 %v5423_v19  ;;  %v5065_v44 = vld [vmem:[#allocation4 + $0x5ac] sm:$0xf]  ;;  %v4133_v54 = vor.u32 %v4993_v41, %v4130_v43  ;;  %v4016_v41 = vld [vmem:[#allocation4 + $0x280] sm:$0xf] }
 0x140   :  { %2720 = vmatpush.bf16.msrb.mxu2 %v4253_v47  ;;  %2663 = vmatmul.bf16.vlgmr.msra.gmra.mxu3 %v5426_v27  ;;  %v4418_v47 = vld [vmem:[#allocation4 + $0x5c0] sm:$0xf0] }
 0x141   :  { %2707 = vmatpush.bf16.msrb.mxu3 %v4061_v58  ;;  %v4421_v57 = vor.u32 %v5065_v44, %v4418_v47  ;;  %v4987_v58 = vld [vmem:[#allocation4 + $0x33c] sm:$0xf]  ;;  %v4325_v44 = vor.u32 %v5041_v45, %v4322_v34  ;;  %v3824_v47 = vld [vmem:[#allocation4 + $0x100] sm:$0xf]  ;;  %v4376_v45 = vld [vmem:[#allocation4 + $0x550] sm:$0xf] }
 0x142   :  { %2685 = vmatpush.bf16.msra.mxu1 %v4537_v59  ;;  %v4589_v59 = vor.u32 %v5107_v49, %v4586_v50  ;;  %v4109_v2 = vor.u32 %v4987_v58, %v4106_v60  ;;  %v3992_v58 = vld [vmem:[#allocation4 + $0x250] sm:$0xf]  ;;  %v5057_v34 = vld [vmem:[#allocation4 + $0x564] sm:$0xf0] }
 0x143   :  { %2699 = vmatpush.bf16.msra.mxu0 %v3749_v31  ;;  %v4394_v31 = vld [vmem:[#allocation4 + $0x590] sm:$0xf0] }
 0x144   :  { %2721 = vmatpush.bf16.msrb.mxu2 %v4229_v10  ;;  %v3941_v10 = vor.u32 %v4945_v51, %v3938_v56  ;;  %v4397_v46 = vor.u32 %v5059_v61, %v4394_v31  ;;  %v5035_v51 = vld [vmem:[#allocation4 + $0x4bc] sm:$0xf]  ;;  %v4298_v56 = vld [vmem:[#allocation4 + $0x4d0] sm:$0xf0]  ;;  %v4448_v61 = vld [vmem:[#allocation4 + $0x5e0] sm:$0xf] }
 0x145   :  { %2708 = vmatpush.bf16.msrb.mxu3 %v4037_v24  ;;  %v4981_v24 = vld [vmem:[#allocation4 + $0x30c] sm:$0xf]  ;;  %v5075_v31 = vld [vmem:[#allocation4 + $0x5f4] sm:$0xf0] }
 0x146   :  { %2686 = vmatpush.bf16.msra.mxu1 %v4513_v3  ;;  %v4082_v3 = vld [vmem:[#allocation4 + $0x320] sm:$0xf0] }
 0x147   :  { %2700 = vmatpush.bf16.msra.mxu0 %v3725_v55  ;;  %v4370_v55 = vld [vmem:[#allocation4 + $0x560] sm:$0xf0] }
 0x148   :  { %2722 = vmatpush.bf16.msrb.mxu2 %v4205_v6  ;;  %v5095_v6 = vld [vmem:[#allocation4 + $0x69c] sm:$0xf]  ;;  %v4373_v17 = vor.u32 %v5053_v15, %v4370_v55  ;;  %v4256_v15 = vld [vmem:[#allocation4 + $0x460] sm:$0xf]  ;;  %v5027_v55 = vld [vmem:[#allocation4 + $0x474] sm:$0xf0] }
 0x149   :  { %2709 = vmatpush.bf16.msrb.mxu3 %v4013_v14  ;;  %v4085_v14 = vor.u32 %v4981_v24, %v4082_v3  ;;  %v4541_v21 = vor.u32 %v5095_v6, %v4538_v8  ;;  %v3968_v24 = vld [vmem:[#allocation4 + $0x220] sm:$0xf]  ;;  %v4449_v3 = vor.u32 %v5075_v31, %v4448_v61  ;;  %v3801_v6 = vor.u32 %v4913_v36, %v3800_v62  ;;  %v5069_v8 = vld [vmem:[#allocation4 + $0x5c4] sm:$0xf0] }
 0x14a   :  { %2687 = vmatpush.bf16.msra.mxu1 %v4489_v20  ;;  %v4931_v20 = vld [vmem:[#allocation4 + $0x174] sm:$0xf0]  ;;  %v4640_v31 = vld [vmem:[#allocation4 + $0x760] sm:$0xf] }
 0x14b   :  { %2701 = vmatpush.bf16.msra.mxu0 %v3701_v52  ;;  %v5047_v52 = vld [vmem:[#allocation4 + $0x51c] sm:$0xf]  ;;  %v3873_v32 = vor.u32 %v4931_v20, %v3872_v18  ;;  %v4949_v20 = vld [vmem:[#allocation4 + $0x204] sm:$0xf0] }
 0x14c   :  { %2723 = vmatpush.bf16.msrb.mxu2 %v4181_v23  ;;  %v4346_v23 = vld [vmem:[#allocation4 + $0x530] sm:$0xf0] }
 0x14d   :  { %2710 = vmatpush.bf16.msrb.mxu3 %v3989_v33  ;;  %v4349_v53 = vor.u32 %v5047_v52, %v4346_v23  ;;  %v3848_v33 = vld [vmem:[#allocation4 + $0x130] sm:$0xf]  ;;  %v3777_v52 = vor.u32 %v4907_v12, %v3776_v11  ;;  %v4400_v23 = vld [vmem:[#allocation4 + $0x580] sm:$0xf] }
 0x14e   :  { %2702 = vmatmul.bf16.vlgmr.msra.gmra.mxu0 %v5409_v4  ;;  %2688 = vmatpush.bf16.msra.mxu1 %v4465_v37  ;;  %v3849_v43 = vor.u32 %v4925_v35, %v3848_v33  ;;  %v4943_v33 = vld [vmem:[#allocation4 + $0x1d4] sm:$0xf0]  ;;  %v4208_v35 = vld [vmem:[#allocation4 + $0x400] sm:$0xf]  ;;  %v4136_v12 = vld [vmem:[#allocation4 + $0x370] sm:$0xf] }
 0x14f   :  { %2746 = vmatpush.bf16.msrb.mxu0 %v4637_v29  ;;  %v4040_v29 = vld [vmem:[#allocation4 + $0x2b0] sm:$0xf] }
 0x150   :  { %2724 = vmatpush.bf16.msrb.mxu2 %v4157_v39  ;;  %v4041_v37 = vor.u32 %v4973_v30, %v4040_v29  ;;  %v5083_v39 = vld [vmem:[#allocation4 + $0x63c] sm:$0xf] }
 0x151   :  { %2689 = vmatmul.bf16.vlgmr.msra.gmra.mxu1 %v5434_v13  ;;  %2711 = vmatpush.bf16.msrb.mxu3 %v3965_v48  ;;  %v4919_v48 = vld [vmem:[#allocation4 + $0x114] sm:$0xf0] }
 0x152   :  { %2733 = vmatpush.bf16.msrb.mxu1 %v4445_v40  ;;  %v4490_v40 = vld [vmem:[#allocation4 + $0x650] sm:$0xf0]  ;;  %v3825_v60 = vor.u32 %v4919_v48, %v3824_v47  ;;  %v4377_v47 = vor.u32 %v5057_v34, %v4376_v45  ;;  %v4184_v48 = vld [vmem:[#allocation4 + $0x3d0] sm:$0xf]  ;;  %v4258_v45 = vld [vmem:[#allocation4 + $0x478] sm:$0xf0] }
 0x153   :  { %2747 = vmatpush.bf16.msrb.mxu0 %v4613_v42  ;;  %v4967_v42 = vld [vmem:[#allocation4 + $0x294] sm:$0xf0]  ;;  %v4493_v49 = vor.u32 %v5083_v39, %v4490_v40  ;;  %v3728_v39 = vld [vmem:[#allocation4 + $0x40] sm:$0xf] }
 0x154   :  { %2725 = vmatpush.bf16.msrb.mxu2 %v4133_v54  ;;  %v4017_v50 = vor.u32 %v4967_v42, %v4016_v41  ;;  %v5077_v54 = vld [vmem:[#allocation4 + $0x60c] sm:$0xf]  ;;  %v4895_v40 = vld [vmem:[#allocation4 + $0x54] sm:$0xf0] }
 0x155   :  { %2712 = vmatpush.bf16.msrb.mxu3 %v3941_v10  ;;  %v4301_v10 = vor.u32 %v5035_v51, %v4298_v56  ;;  %v3729_v51 = vor.u32 %v4895_v40, %v3728_v39  ;;  %v5051_v56 = vld [vmem:[#allocation4 + $0x534] sm:$0xf0]  ;;  %v4568_v39 = vld [vmem:[#allocation4 + $0x6d0] sm:$0xf]  ;;  %v5105_v40 = vld [vmem:[#allocation4 + $0x6e4] sm:$0xf0] }
 0x156   :  { %2734 = vmatpush.bf16.msrb.mxu1 %v4421_v57  ;;  %v4466_v57 = vld [vmem:[#allocation4 + $0x620] sm:$0xf0] }
 0x157   :  { %2748 = vmatpush.bf16.msrb.mxu0 %v4589_v59  ;;  %v4961_v59 = vld [vmem:[#allocation4 + $0x264] sm:$0xf0]  ;;  %v4469_v0 = vor.u32 %v5077_v54, %v4466_v57  ;;  %v4928_v54 = vld [vmem:[#allocation4 + $0x164] sm:$0xf]  ;;  %v3874_v57 = vld [vmem:[#allocation4 + $0x178] sm:$0xf0] }
 0x158   :  { %2726 = vmatpush.bf16.msrb.mxu2 %v4109_v2  ;;  %v3993_v1 = vor.u32 %v4961_v59, %v3992_v58  ;;  %v5029_v2 = vld [vmem:[#allocation4 + $0x48c] sm:$0xf]  ;;  %v3704_v58 = vld [vmem:[#allocation4 + $0x10] sm:$0xf]  ;;  %v4889_v59 = vld [vmem:[#allocation4 + $0x24] sm:$0xf0]  ;;  %v3877_v36 = vor.u32 %v4928_v54, %v3874_v57 }
 0x159   :  { %2713 = vmatpush.bf16.msrb.mxu3 %v3917_v7  ;;  %v4424_v7 = vld [vmem:[#allocation4 + $0x5b0] sm:$0xf]  ;;  %v5018_v54 = vld [vmem:[#allocation4 + $0x434] sm:$0xf]  ;;  %v4234_v57 = vld [vmem:[#allocation4 + $0x448] sm:$0xf0] }
 0x15a   :  { %2735 = vmatpush.bf16.msrb.mxu1 %v4397_v46  ;;  %v4274_v46 = vld [vmem:[#allocation4 + $0x4a0] sm:$0xf0]  ;;  %v4425_v18 = vor.u32 %v5069_v8, %v4424_v7  ;;  %v4616_v7 = vld [vmem:[#allocation4 + $0x730] sm:$0xf]  ;;  %v5117_v8 = vld [vmem:[#allocation4 + $0x744] sm:$0xf0] }
 0x15b   :  { %2749 = vmatpush.bf16.msrb.mxu0 %v4565_v5  ;;  %v4955_v5 = vld [vmem:[#allocation4 + $0x234] sm:$0xf0]  ;;  %v4277_v9 = vor.u32 %v5029_v2, %v4274_v46  ;;  %v4328_v2 = vld [vmem:[#allocation4 + $0x4f0] sm:$0xf] }
 0x15c   :  { %2727 = vmatpush.bf16.msrb.mxu2 %v4085_v14  ;;  %v3969_v16 = vor.u32 %v4955_v5, %v3968_v24  ;;  %v4257_v14 = vor.u32 %v5027_v55, %v4256_v15  ;;  %v3705_v24 = vor.u32 %v4889_v59, %v3704_v58  ;;  %v4922_v5 = vld [vmem:[#allocation4 + $0x134] sm:$0xf]  ;;  %v3850_v15 = vld [vmem:[#allocation4 + $0x148] sm:$0xf0]  ;;  %v4544_v59 = vld [vmem:[#allocation4 + $0x6a0] sm:$0xf] }
 0x15d   :  { %2714 = vmatpush.bf16.msrb.mxu3 %v3893_v26  ;;  %v3752_v26 = vld [vmem:[#allocation4 + $0x70] sm:$0xf]  ;;  %v3853_v11 = vor.u32 %v4922_v5, %v3850_v15  ;;  %v5012_v5 = vld [vmem:[#allocation4 + $0x404] sm:$0xf]  ;;  %v4210_v15 = vld [vmem:[#allocation4 + $0x418] sm:$0xf0] }
 0x15e   :  { %2736 = vmatpush.bf16.msrb.mxu1 %v4373_v17  ;;  %v3944_v17 = vld [vmem:[#allocation4 + $0x1f0] sm:$0xf] }
 0x15f   :  { %2750 = vmatpush.bf16.msrb.mxu0 %v4541_v21  ;;  %2728 = vmatmul.bf16.vlgmr.msrb.gmra.mxu2 %v5426_v27  ;;  %v4232_v21 = vld [vmem:[#allocation4 + $0x430] sm:$0xf]  ;;  %v3945_v29 = vor.u32 %v4949_v20, %v3944_v17  ;;  %v5039_v17 = vld [vmem:[#allocation4 + $0x4d4] sm:$0xf0]  ;;  %v3826_v20 = vld [vmem:[#allocation4 + $0x118] sm:$0xf0] }
 0x160   :  { %2772 = vmatpush.bf16.msra.mxu2 %v4065_v22  ;;  %2715 = vmatmul.bf16.vlgmr.msrb.gmra.mxu3 %v5415_v38  ;;  %v5021_v22 = vld [vmem:[#allocation4 + $0x444] sm:$0xf0] }
 0x161   :  { %2759 = vmatpush.bf16.msra.mxu3 %v3873_v32  ;;  %v4233_v30 = vor.u32 %v5021_v22, %v4232_v21  ;;  %v3920_v32 = vld [vmem:[#allocation4 + $0x1c0] sm:$0xf]  ;;  %v4617_v21 = vor.u32 %v5117_v8, %v4616_v7 }
 0x162   :  { %2737 = vmatpush.bf16.msrb.mxu1 %v4349_v53  ;;  %v4401_v53 = vor.u32 %v5063_v25, %v4400_v23  ;;  %v3921_v41 = vor.u32 %v4943_v33, %v3920_v32  ;;  %v5111_v23 = vld [vmem:[#allocation4 + $0x714] sm:$0xf0]  ;;  %v4910_v33 = vld [vmem:[#allocation4 + $0xd4] sm:$0xf] }
 0x163   :  { %2751 = vmatpush.bf16.msrb.mxu0 %v4517_v63  ;;  %v5015_v63 = vld [vmem:[#allocation4 + $0x414] sm:$0xf0] }
 0x164   :  { %2773 = vmatpush.bf16.msra.mxu2 %v4041_v37  ;;  %v3753_v37 = vor.u32 %v4901_v28, %v3752_v26  ;;  %v4209_v42 = vor.u32 %v5015_v63, %v4208_v35  ;;  %v4112_v28 = vld [vmem:[#allocation4 + $0x340] sm:$0xf]  ;;  %v3802_v35 = vld [vmem:[#allocation4 + $0xe8] sm:$0xf0] }
 0x165   :  { %2760 = vmatpush.bf16.msra.mxu3 %v3849_v43  ;;  %v3896_v43 = vld [vmem:[#allocation4 + $0x190] sm:$0xf] }
 0x166   :  { %2738 = vmatpush.bf16.msrb.mxu1 %v4325_v44  ;;  %v4937_v44 = vld [vmem:[#allocation4 + $0x1a4] sm:$0xf0] }
 0x167   :  { %2752 = vmatpush.bf16.msrb.mxu0 %v4493_v49  ;;  %v5009_v49 = vld [vmem:[#allocation4 + $0x3e4] sm:$0xf0] }
 0x168   :  { %2774 = vmatpush.bf16.msra.mxu2 %v4017_v50  ;;  %v4352_v50 = vld [vmem:[#allocation4 + $0x520] sm:$0xf]  ;;  %v4185_v61 = vor.u32 %v5009_v49, %v4184_v48  ;;  %v3778_v49 = vld [vmem:[#allocation4 + $0xb8] sm:$0xf0] }
 0x169   :  { %2761 = vmatpush.bf16.msra.mxu3 %v3825_v60  ;;  %v3897_v60 = vor.u32 %v4937_v44, %v3896_v43  ;;  %v4353_v62 = vor.u32 %v5051_v56, %v4352_v50  ;;  %v4088_v43 = vld [vmem:[#allocation4 + $0x310] sm:$0xf]  ;;  %v4985_v44 = vld [vmem:[#allocation4 + $0x324] sm:$0xf0]  ;;  %v4976_v50 = vld [vmem:[#allocation4 + $0x2e4] sm:$0xf]  ;;  %v4569_v56 = vor.u32 %v5105_v40, %v4568_v39 }
 0x16a   :  { %2739 = vmatpush.bf16.msrb.mxu1 %v4301_v10  ;;  %v5123_v10 = vld [vmem:[#allocation4 + $0x774] sm:$0xf0]  ;;  %v4089_v58 = vor.u32 %v4985_v44, %v4088_v43  ;;  %v5081_v39 = vld [vmem:[#allocation4 + $0x624] sm:$0xf0]  ;;  %v5072_v43 = vld [vmem:[#allocation4 + $0x5e4] sm:$0xf] }
 0x16b   :  { %2753 = vmatpush.bf16.msrb.mxu0 %v4469_v0  ;;  %v4160_v0 = vld [vmem:[#allocation4 + $0x3a0] sm:$0xf]  ;;  %v4641_v55 = vor.u32 %v5123_v10, %v4640_v31  ;;  %v4898_v10 = vld [vmem:[#allocation4 + $0x74] sm:$0xf]  ;;  %v4450_v44 = vld [vmem:[#allocation4 + $0x5f8] sm:$0xf0] }
 0x16c   :  { %2775 = vmatpush.bf16.msra.mxu2 %v3993_v1  ;;  %v5003_v1 = vld [vmem:[#allocation4 + $0x3b4] sm:$0xf0] }
 0x16d   :  { %2762 = vmatpush.bf16.msra.mxu3 %v3801_v6  ;;  %v4161_v6 = vor.u32 %v5003_v1, %v4160_v0  ;;  %v3754_v0 = vld [vmem:[#allocation4 + $0x88] sm:$0xf0]  ;;  %v4970_v1 = vld [vmem:[#allocation4 + $0x2b4] sm:$0xf] }
 0x16e   :  { %2754 = vmatmul.bf16.vlgmr.msrb.gmra.mxu0 %v5434_v13  ;;  %2740 = vmatpush.bf16.msrb.mxu1 %v4277_v9  ;;  %v5450_v46 = vpop.f32.mrf.mxu3  ;;  %v3757_v7 = vor.u32 %v4898_v10, %v3754_v0  ;;  %v5066_v10 = vld [vmem:[#allocation4 + $0x5b4] sm:$0xf] }
 0x16f   :  { %2798 = vmatpush.bf16.msra.mxu0 %v4449_v3  ;;  %v5045_v3 = vld [vmem:[#allocation4 + $0x504] sm:$0xf0] }
 0x170   :  { %2776 = vmatpush.bf16.msra.mxu2 %v3969_v16  ;;  %v4329_v9 = vor.u32 %v5045_v3, %v4328_v2  ;;  %v4997_v16 = vld [vmem:[#allocation4 + $0x384] sm:$0xf0]  ;;  %v4042_v2 = vld [vmem:[#allocation4 + $0x2c8] sm:$0xf0] }
 0x171   :  { %2741 = vmatmul.bf16.vlgmr.msrb.gmra.mxu1 %v5423_v19  ;;  %2763 = vmatpush.bf16.msra.mxu3 %v3777_v52  ;;  %v4137_v22 = vor.u32 %v4997_v16, %v4136_v12  ;;  %v4592_v52 = vld [vmem:[#allocation4 + $0x700] sm:$0xf]  ;;  %v4045_v8 = vor.u32 %v4970_v1, %v4042_v2  ;;  %v3730_v12 = vld [vmem:[#allocation4 + $0x58] sm:$0xf0]  ;;  %v4964_v16 = vld [vmem:[#allocation4 + $0x284] sm:$0xf] }
 0x172   :  { %2785 = vmatpush.bf16.msra.mxu1 %v4257_v14  ;;  %v4304_v14 = vld [vmem:[#allocation4 + $0x4c0] sm:$0xf]  ;;  %v4593_v63 = vor.u32 %v5111_v23, %v4592_v52  ;;  %v4946_v2 = vld [vmem:[#allocation4 + $0x1f4] sm:$0xf] }
 0x173   :  { %2799 = vmatpush.bf16.msra.mxu0 %v4425_v18  ;;  %v4916_v18 = vld [vmem:[#allocation4 + $0x104] sm:$0xf]  ;;  %v4305_v25 = vor.u32 %v5039_v17, %v4304_v14  ;;  %v4018_v14 = vld [vmem:[#allocation4 + $0x298] sm:$0xf0]  ;;  %v5006_v17 = vld [vmem:[#allocation4 + $0x3d4] sm:$0xf] }
 0x174   :  { %2777 = vmatpush.bf16.msra.mxu2 %v3945_v29  ;;  %v3829_v26 = vor.u32 %v4916_v18, %v3826_v20  ;;  %v4991_v29 = vld [vmem:[#allocation4 + $0x354] sm:$0xf0]  ;;  %v4186_v18 = vld [vmem:[#allocation4 + $0x3e8] sm:$0xf0]  ;;  %v4496_v20 = vld [vmem:[#allocation4 + $0x640] sm:$0xf]  ;;  %v4021_v23 = vor.u32 %v4964_v16, %v4018_v14 }
 0x175   :  { %2764 = vmatpush.bf16.msra.mxu3 %v3753_v37  ;;  %v5024_v37 = vld [vmem:[#allocation4 + $0x464] sm:$0xf]  ;;  %v4113_v34 = vor.u32 %v4991_v29, %v4112_v28  ;;  %v4189_v29 = vor.u32 %v5006_v17, %v4186_v18  ;;  %v4982_v17 = vld [vmem:[#allocation4 + $0x314] sm:$0xf]  ;;  %v4090_v18 = vld [vmem:[#allocation4 + $0x328] sm:$0xf0] }
 0x176   :  { %2786 = vmatpush.bf16.msra.mxu1 %v4233_v30  ;;  %v4280_v30 = vld [vmem:[#allocation4 + $0x490] sm:$0xf]  ;;  %v2510_v32 = vpop.f32.mrf.mxu3  ;;  %v4261_v48 = vor.u32 %v5024_v37, %v4258_v45  ;;  %v4642_v37 = vld [vmem:[#allocation4 + $0x778] sm:$0xf0]  ;;  %v4940_v14 = vld [vmem:[#allocation4 + $0x1c4] sm:$0xf] }
 0x177   :  { %2800 = vmatpush.bf16.msra.mxu0 %v4401_v53  ;;  %v5033_v53 = vld [vmem:[#allocation4 + $0x4a4] sm:$0xf0]  ;;  %v3994_v32 = vld [vmem:[#allocation4 + $0x268] sm:$0xf0] }
 0x178   :  { %2778 = vmatpush.bf16.msra.mxu2 %v3921_v41  ;;  %v4281_v41 = vor.u32 %v5033_v53, %v4280_v30  ;;  %v4958_v30 = vld [vmem:[#allocation4 + $0x254] sm:$0xf]  ;;  %v5000_v53 = vld [vmem:[#allocation4 + $0x3a4] sm:$0xf] }
 0x179   :  { %2765 = vmatpush.bf16.msra.mxu3 %v3729_v51  ;;  %v4066_v51 = vld [vmem:[#allocation4 + $0x2f8] sm:$0xf0] }
 0x17a   :  { %2787 = vmatpush.bf16.msra.mxu1 %v4209_v42  ;;  %v3805_v42 = vor.u32 %v4910_v33, %v3802_v35  ;;  %v4069_v31 = vor.u32 %v4976_v50, %v4066_v51  ;;  %v4162_v35 = vld [vmem:[#allocation4 + $0x3b8] sm:$0xf0]  ;;  %v4994_v51 = vld [vmem:[#allocation4 + $0x374] sm:$0xf] }
 0x17b   :  { %2801 = vmatpush.bf16.msra.mxu0 %v4377_v47  ;;  %v4904_v47 = vld [vmem:[#allocation4 + $0xa4] sm:$0xf]  ;;  %v3970_v50 = vld [vmem:[#allocation4 + $0x238] sm:$0xf0] }
 0x17c   :  { %2779 = vmatpush.bf16.msra.mxu2 %v3897_v60  ;;  %v5099_v60 = vld [vmem:[#allocation4 + $0x6b4] sm:$0xf0] }
 0x17d   :  { %2766 = vmatpush.bf16.msra.mxu3 %v3705_v24  ;;  %v4545_v3 = vor.u32 %v5099_v60, %v4544_v59  ;;  %v4453_v60 = vor.u32 %v5072_v43, %v4450_v44 }
 0x17e   :  { %2788 = vmatpush.bf16.msra.mxu1 %v4185_v61  ;;  %v3781_v61 = vor.u32 %v4904_v47, %v3778_v49  ;;  %v4165_v47 = vor.u32 %v5000_v53, %v4162_v35  ;;  %v4952_v49 = vld [vmem:[#allocation4 + $0x224] sm:$0xf] }
 0x17f   :  { %2802 = vmatpush.bf16.msra.mxu0 %v4353_v62  ;;  %2780 = vmatmul.bf16.vlgmr.msra.gmra.mxu2 %v5415_v38  ;;  %v5096_v53 = vld [vmem:[#allocation4 + $0x6a4] sm:$0xf] }
 0x180   :  { %2824 = vmatpush.bf16.msrb.mxu2 %v3877_v36  ;;  %2767 = vmatmul.bf16.vlgmr.msra.gmra.mxu3 %v5409_v4  ;;  %v4237_v36 = vor.u32 %v5018_v54, %v4234_v57  ;;  %v4138_v54 = vld [vmem:[#allocation4 + $0x388] sm:$0xf0]  ;;  %v5114_v57 = vld [vmem:[#allocation4 + $0x734] sm:$0xf] }
 0x181   :  { %2811 = vmatpush.bf16.msrb.mxu3 %v4641_v55  ;;  %v2521_v62 = vpop.f32.mrf.mxu2  ;;  %v4520_v55 = vld [vmem:[#allocation4 + $0x670] sm:$0xf]  ;;  %v4141_v0 = vor.u32 %v4994_v51, %v4138_v54 }
 0x182   :  { %2789 = vmatpush.bf16.msra.mxu1 %v4161_v6  ;;  %v2522_v24 = vadd.f32 %v2521_v62, %v5450_v46  ;;  %v5093_v6 = vld [vmem:[#allocation4 + $0x684] sm:$0xf0]  ;;  %v4426_v62 = vld [vmem:[#allocation4 + $0x5c8] sm:$0xf0] }
 0x183   :  { %2803 = vmatpush.bf16.msra.mxu0 %v4329_v9  ;;  %v4892_v9 = vld [vmem:[#allocation4 + $0x44] sm:$0xf]  ;;  %v4521_v46 = vor.u32 %v5093_v6, %v4520_v55  ;;  %v4594_v55 = vld [vmem:[#allocation4 + $0x718] sm:$0xf0] }
 0x184   :  { %2825 = vmatpush.bf16.msrb.mxu2 %v3853_v11  ;;  %v4213_v11 = vor.u32 %v5012_v5, %v4210_v15  ;;  %v3733_v52 = vor.u32 %v4892_v9, %v3730_v12  ;;  %v4114_v5 = vld [vmem:[#allocation4 + $0x358] sm:$0xf0]  ;;  %v5108_v15 = vld [vmem:[#allocation4 + $0x704] sm:$0xf] }
 0x185   :  { %2812 = vmatpush.bf16.msrb.mxu3 %v4617_v21  ;;  %v5087_v21 = vld [vmem:[#allocation4 + $0x654] sm:$0xf0]  ;;  %v5060_v9 = vld [vmem:[#allocation4 + $0x584] sm:$0xf]  ;;  %v4597_v16 = vor.u32 %v5108_v15, %v4594_v55 }
 0x186   :  { %2790 = vmatpush.bf16.msra.mxu1 %v4137_v22  ;;  %v4497_v33 = vor.u32 %v5087_v21, %v4496_v20  ;;  %v5102_v20 = vld [vmem:[#allocation4 + $0x6d4] sm:$0xf]  ;;  %v4570_v21 = vld [vmem:[#allocation4 + $0x6e8] sm:$0xf0] }
 0x187   :  { %2804 = vmatpush.bf16.msra.mxu0 %v4305_v25  ;;  %v4886_v25 = vld [vmem:[#allocation4 + $0x14] sm:$0xf] }
 0x188   :  { %2826 = vmatpush.bf16.msrb.mxu2 %v3829_v26  ;;  %v3706_v26 = vld [vmem:[#allocation4 + $0x28] sm:$0xf0] }
 0x189   :  { %2813 = vmatpush.bf16.msrb.mxu3 %v4593_v63  ;;  %v2523_v28 = vpop.f32.mrf.mxu2  ;;  %v5120_v63 = vld [vmem:[#allocation4 + $0x764] sm:$0xf] }
 0x18a   :  { %2791 = vmatpush.bf16.msra.mxu1 %v4113_v34  ;;  %v4472_v34 = vld [vmem:[#allocation4 + $0x610] sm:$0xf]  ;;  %v4093_v28 = vor.u32 %v4982_v17, %v4090_v18  ;;  %v5128_v18 = vld [vmem:[#allocation6 + $0x20] sm:$0xff] }
 0x18b   :  { %2805 = vmatpush.bf16.msra.mxu0 %v4281_v41  ;;  %v2547_v22 = vpop.f32.mrf.mxu0  ;;  %v3709_v41 = vor.u32 %v4886_v25, %v3706_v26  ;;  %v4378_v25 = vld [vmem:[#allocation4 + $0x568] sm:$0xf0] }
 0x18c   :  { %2827 = vmatpush.bf16.msrb.mxu2 %v3805_v42  ;;  %v2534_v45 = vpop.f32.mrf.mxu1  ;;  %v3997_v42 = vor.u32 %v4958_v30, %v3994_v32  ;;  %v4934_v30 = vld [vmem:[#allocation4 + $0x194] sm:$0xf]  ;;  %v3898_v32 = vld [vmem:[#allocation4 + $0x1a8] sm:$0xf0] }
 0x18d   :  { %2814 = vmatpush.bf16.msrb.mxu3 %v4569_v56  ;;  %v2535_v40 = vadd.f32 %v2534_v45, %v2522_v24  ;;  %v4473_v56 = vor.u32 %v5081_v39, %v4472_v34  ;;  %v3946_v24 = vld [vmem:[#allocation4 + $0x208] sm:$0xf0]  ;;  %v3901_v45 = vor.u32 %v4934_v30, %v3898_v32  ;;  %v5048_v34 = vld [vmem:[#allocation4 + $0x524] sm:$0xf]  ;;  %v4354_v39 = vld [vmem:[#allocation4 + $0x538] sm:$0xf0] }
 0x18e   :  { %2806 = vmatmul.bf16.vlgmr.msra.gmra.mxu0 %v5423_v19  ;;  %2792 = vmatpush.bf16.msra.mxu1 %v4089_v58  ;;  %v4618_v58 = vld [vmem:[#allocation4 + $0x748] sm:$0xf0]  ;;  %v4357_v44 = vor.u32 %v5048_v34, %v4354_v39  ;;  %v5124_v30 = vld [vmem:[#allocation6] sm:$0xff] }
 0x18f   :  { %2850 = vmatpush.bf16.msrb.mxu0 %v4261_v48  ;;  %v4645_v48 = vor.u32 %v5120_v63, %v4642_v37  ;;  %v5457_v59 = vadd.f32 %v2547_v22, %v2535_v40  ;;  %v4621_v1 = vor.u32 %v5114_v57, %v4618_v58  ;;  %v5084_v57 = vld [vmem:[#allocation4 + $0x644] sm:$0xf]  ;;  %v4498_v58 = vld [vmem:[#allocation4 + $0x658] sm:$0xf0] }
 0x190   :  { %2828 = vmatpush.bf16.msrb.mxu2 %v3781_v61 }
 0x191   :  { %2793 = vmatmul.bf16.vlgmr.msra.gmra.mxu1 %v5426_v27  ;;  %2815 = vmatpush.bf16.msrb.mxu3 %v4545_v3  ;;  %v4988_v3 = vld [vmem:[#allocation4 + $0x344] sm:$0xf] }
 0x192   :  { %2837 = vmatpush.bf16.msrb.mxu1 %v4069_v31  ;;  %v3973_v31 = vor.u32 %v4952_v49, %v3970_v50  ;;  %v4117_v12 = vor.u32 %v4988_v3, %v4114_v5  ;;  %v4330_v49 = vld [vmem:[#allocation4 + $0x508] sm:$0xf0] }
 0x193   :  { %2851 = vmatpush.bf16.msrb.mxu0 %v4237_v36  ;;  %v2549_v61 = vpop.f32.mrf.mxu0  ;;  %v2573_v36 = vpop.f32.mrf.mxu2 }
 0x194   :  { %2829 = vmatpush.bf16.msrb.mxu2 %v3757_v7  ;;  %v2536_v6 = vpop.f32.mrf.mxu1  ;;  %v4429_v7 = vor.u32 %v5066_v10, %v4426_v62  ;;  %v4501_v10 = vor.u32 %v5084_v57, %v4498_v58  ;;  %v5078_v62 = vld [vmem:[#allocation4 + $0x614] sm:$0xf]  ;;  %v5136_v57 = vld [vmem:[#allocation6 + $0x60] sm:$0xff] }
 0x195   :  { %2816 = vmatpush.bf16.msrb.mxu3 %v4521_v46  ;;  %v3922_v46 = vld [vmem:[#allocation4 + $0x1d8] sm:$0xf0] }
 0x196   :  { %2838 = vmatpush.bf16.msrb.mxu1 %v4045_v8  ;;  %v3949_v8 = vor.u32 %v4946_v2, %v3946_v24  ;;  %v5030_v2 = vld [vmem:[#allocation4 + $0x494] sm:$0xf] }
 0x197   :  { %2852 = vmatpush.bf16.msrb.mxu0 %v4213_v11  ;;  %v4402_v11 = vld [vmem:[#allocation4 + $0x598] sm:$0xf0] }
 0x198   :  { %2830 = vmatpush.bf16.msrb.mxu2 %v3733_v52  ;;  %v3925_v52 = vor.u32 %v4940_v14, %v3922_v46  ;;  %v5129_v46 = vld [vmem:[#allocation6 + $0x28] sm:$0xff] }
 0x199   :  { %2817 = vmatpush.bf16.msrb.mxu3 %v4497_v33  ;;  %v4546_v33 = vld [vmem:[#allocation4 + $0x6b8] sm:$0xf0] }
 0x19a   :  { %2839 = vmatpush.bf16.msrb.mxu1 %v4021_v23  ;;  %v5054_v23 = vld [vmem:[#allocation4 + $0x554] sm:$0xf]  ;;  %v4549_v40 = vor.u32 %v5096_v53, %v4546_v33 }
 0x19b   :  { %2853 = vmatpush.bf16.msrb.mxu0 %v4189_v29  ;;  %v2599_v22 = vpop.f32.mrf.mxu0  ;;  %v2575_v26 = vpop.f32.mrf.mxu2  ;;  %v4573_v29 = vor.u32 %v5102_v20, %v4570_v21  ;;  %v4381_v63 = vor.u32 %v5054_v23, %v4378_v25  ;;  %v5127_v21 = vld [vmem:[#allocation6 + $0x18] sm:$0xff] }
 0x19c   :  { %2831 = vmatpush.bf16.msrb.mxu2 %v3709_v41  ;;  %v5090_v41 = vld [vmem:[#allocation4 + $0x674] sm:$0xf] }
 0x19d   :  { %2818 = vmatpush.bf16.msrb.mxu3 %v4473_v56  ;;  %v2586_v35 = vpop.f32.mrf.mxu1 }
 0x19e   :  { %2840 = vmatpush.bf16.msrb.mxu1 %v3997_v42  ;;  %v2587_v37 = vadd.f32 %v2586_v35, %v2573_v36  ;;  %v4522_v42 = vld [vmem:[#allocation4 + $0x688] sm:$0xf0] }
 0x19f   :  { %2854 = vmatpush.bf16.msrb.mxu0 %v4165_v47  ;;  %2832 = vmatmul.bf16.vlgmr.msrb.gmra.mxu2 %v5409_v4  ;;  %v4405_v4 = vor.u32 %v5060_v9, %v4402_v11  ;;  %v4525_v51 = vor.u32 %v5090_v41, %v4522_v42  ;;  %v4474_v36 = vld [vmem:[#allocation4 + $0x628] sm:$0xf0]  ;;  %v5130_v11 = vld [vmem:[#allocation6 + $0x30] sm:$0xff] }
 0x1a0   :  { %2876 = vmatpush.bf16.msra.mxu2 %v4645_v48  ;;  %2819 = vmatmul.bf16.vlgmr.msrb.gmra.mxu3 %v5434_v13  ;;  %v2600_v43 = vadd.f32 %v2599_v22, %v2587_v37  ;;  %v5042_v48 = vld [vmem:[#allocation4 + $0x4f4] sm:$0xf]  ;;  %v4477_v3 = vor.u32 %v5078_v62, %v4474_v36  ;;  %v5133_v62 = vld [vmem:[#allocation6 + $0x48] sm:$0xff] }
 0x1a1   :  { %2863 = vmatpush.bf16.msra.mxu3 %v4453_v60  ;;  %v4333_v61 = vor.u32 %v5042_v48, %v4330_v49 }
 0x1a2   :  { %2841 = vmatpush.bf16.msrb.mxu1 %v3973_v31  ;;  %v2560_v50 = vpop.f32.mrf.mxu3  ;;  %v5036_v31 = vld [vmem:[#allocation4 + $0x4c4] sm:$0xf] }
 0x1a3   :  { %2855 = vmatpush.bf16.msrb.mxu0 %v4141_v0  ;;  %v2601_v47 = vpop.f32.mrf.mxu0  ;;  %v5463_v56 = vadd.f32 %v2560_v50, %v5457_v59  ;;  %v4282_v59 = vld [vmem:[#allocation4 + $0x4a8] sm:$0xf0] }
 0x1a4   :  { %2877 = vmatpush.bf16.msra.mxu2 %v4621_v1  ;;  %v2625_v54 = vpop.f32.mrf.mxu2  ;;  %v5137_v50 = vld [vmem:[#allocation6 + $0x68] sm:$0xff] }
 0x1a5   :  { %2864 = vmatpush.bf16.msra.mxu3 %v4429_v7  ;;  %v2588_v60 = vpop.f32.mrf.mxu1 }
 0x1a6   :  { %2842 = vmatpush.bf16.msrb.mxu1 %v3949_v8  ;;  %v5131_v8 = vld [vmem:[#allocation6 + $0x38] sm:$0xff] }
 0x1a7   :  { %2856 = vmatpush.bf16.msrb.mxu0 %v4117_v12 }
 0x1a8   :  { %2878 = vmatpush.bf16.msra.mxu2 %v4597_v16 }
 0x1a9   :  { %2865 = vmatpush.bf16.msra.mxu3 %v4405_v4 }
 0x1aa   :  { %2843 = vmatpush.bf16.msrb.mxu1 %v3925_v52  ;;  %v2562_v24 = vpop.f32.mrf.mxu3 }
 0x1ab   :  { %2857 = vmatpush.bf16.msrb.mxu0 %v4093_v28  ;;  %v2651_v1 = vpop.f32.mrf.mxu0  ;;  %v5125_v28 = vld [vmem:[#allocation6 + $0x8] sm:$0xff]  ;;  %v5146_v24 = vld [vmem:[#allocation6 + $0xb0] sm:$0xff] }
 0x1ac   :  { %2879 = vmatpush.bf16.msra.mxu2 %v4573_v29  ;;  %v2627_v5 = vpop.f32.mrf.mxu2 }
 0x1ad   :  { %2866 = vmatpush.bf16.msra.mxu3 %v4381_v63  ;;  %v5145_v5 = vld [vmem:[#allocation6 + $0xa8] sm:$0xff] }
 0x1ae   :  { %2858 = vmatmul.bf16.vlgmr.msrb.gmra.mxu0 %v5426_v27  ;;  %2844 = vmatpush.bf16.msrb.mxu1 %v3901_v45  ;;  %v4306_v27 = vld [vmem:[#allocation4 + $0x4d8] sm:$0xf0]  ;;  %v2638_v15 = vpop.f32.mrf.mxu1 }
 0x1af   :  { %v4309_v0 = vor.u32 %v5036_v31, %v4306_v27  ;;  %v2652_v55 = vadd.f32 %v2651_v1, %v2638_v15  ;;  %v5139_v45 = vld [vmem:[#allocation6 + $0x78] sm:$0xff]  ;;  %v5134_v31 = vld [vmem:[#allocation6 + $0x50] sm:$0xff]  ;;  %v5144_v15 = vld [vmem:[#allocation6 + $0xa0] sm:$0xff] }
 0x1b0   :  { %2880 = vmatpush.bf16.msra.mxu2 %v4549_v40  ;;  %v5475_v40 = vld [vmem:[%s5496_s4] sm:$0x7]  ;;  %3118 = vmatpush.bf16.msra.mxu0 %v5139_v45 }
 0x1b1   :  { %2845 = vmatmul.bf16.vlgmr.msrb.gmra.mxu1 %v5415_v38  ;;  %2867 = vmatpush.bf16.msra.mxu3 %v4357_v44  ;;  %v4285_v38 = vor.u32 %v5030_v2, %v4282_v59  ;;  %v2894_v47 = vperm.slane %v5475_v40, 0  ;;  %v5147_v2 = vld [vmem:[#allocation6 + $0xb8] sm:$0xff] }
 0x1b2   :  { %v2612_v7 = vpop.f32.mrf.mxu3  ;;  %3105 = vmatpush.bf16.msra.mxu1 %v5131_v8 }
 0x1b3   :  { %v2653_v6 = vpop.f32.mrf.mxu0  ;;  %v2613_v9 = vadd.f32 %v2612_v7, %v2600_v43  ;;  %v5138_v43 = vld [vmem:[#allocation6 + $0x70] sm:$0xff] }
 0x1b4   :  { %2881 = vmatpush.bf16.msra.mxu2 %v4525_v51  ;;  %3119 = vmatpush.bf16.msra.mxu0 %v5138_v43  ;;  %v5143_v6 = vld [vmem:[#allocation6 + $0x98] sm:$0xff] }
 0x1b5   :  { %2868 = vmatpush.bf16.msra.mxu3 %v4333_v61  ;;  %v5468_v12 = vadd.f32 %v2625_v54, %v2613_v9  ;;  %v5135_v61 = vld [vmem:[#allocation6 + $0x58] sm:$0xff]  ;;  %v5142_v9 = vld [vmem:[#allocation6 + $0x90] sm:$0xff] }
 0x1b6   :  { %v2640_v16 = vpop.f32.mrf.mxu1  ;;  %3106 = vmatpush.bf16.msra.mxu1 %v5130_v11 }
 0x1b8   :  { %2882 = vmatpush.bf16.msra.mxu2 %v4501_v10  ;;  %3120 = vmatpush.bf16.msra.mxu0 %v5137_v50  ;;  %v5151_v50 = vld [vmem:[#allocation7 + $0x18] sm:$0xff] }
 0x1b9   :  { %2869 = vmatpush.bf16.msra.mxu3 %v4309_v0 }
 0x1ba   :  { %v2614_v14 = vpop.f32.mrf.mxu3  ;;  %3107 = vmatpush.bf16.msra.mxu1 %v5129_v46  ;;  %v2895_v46 = vperm.slane %v5475_v40, 1 }
 0x1bc   :  { %2883 = vmatpush.bf16.msra.mxu2 %v4477_v3  ;;  %3121 = vmatpush.bf16.msra.mxu0 %v5136_v57  ;;  %v5148_v57 = vld [vmem:[#allocation7] sm:$0xff] }
 0x1bd   :  { %2870 = vmatpush.bf16.msra.mxu3 %v4285_v38 }
 0x1be   :  { %3108 = vmatpush.bf16.msra.mxu1 %v5128_v18 }
 0x1bf   :  { %2884 = vmatmul.bf16.vlgmr.msra.gmra.mxu2 %v5434_v13 }
 0x1c0   :  { %2871 = vmatmul.bf16.vlgmr.msra.gmra.mxu3 %v5423_v19  ;;  %v5126_v19 = vld [vmem:[#allocation6 + $0x10] sm:$0xff]  ;;  %3122 = vmatpush.bf16.msra.mxu0 %v5135_v61 }
 0x1c1   :  { %3131 = vmatpush.bf16.msrb.mxu3 %v5147_v2 }
 0x1c2   :  { %v2677_v17 = vpop.f32.mrf.mxu2  ;;  %3109 = vmatpush.bf16.msra.mxu1 %v5127_v21 }
 0x1c3   :  { %v2664_v20 = vpop.f32.mrf.mxu3 }
 0x1c4   :  { %v2665_v13 = vadd.f32 %v2664_v20, %v2652_v55  ;;  %3123 = vmatpush.bf16.msra.mxu0 %v5134_v31 }
 0x1c5   :  { %3132 = vmatpush.bf16.msrb.mxu3 %v5146_v24 }
 0x1c6   :  { %v2678_v4 = vadd.f32 %v2677_v17, %v2665_v13  ;;  %3110 = vmatpush.bf16.msra.mxu1 %v5126_v19  ;;  %v5141_v17 = vld [vmem:[#allocation6 + $0x88] sm:$0xff] }
 0x1c8   :  { %3124 = vmatpush.bf16.msra.mxu0 %v5133_v62 }
 0x1c9   :  { %3133 = vmatpush.bf16.msrb.mxu3 %v5145_v5 }
 0x1ca   :  { %v2679_v52 = vpop.f32.mrf.mxu2  ;;  %3111 = vmatpush.bf16.msra.mxu1 %v5125_v28 }
 0x1cb   :  { %v2703_v22 = vpop.f32.mrf.mxu0  ;;  %v2666_v26 = vpop.f32.mrf.mxu3 }
 0x1cd   :  { %3134 = vmatpush.bf16.msrb.mxu3 %v5144_v15 }
 0x1ce   :  { %v2690_v23 = vpop.f32.mrf.mxu1  ;;  %3112 = vmatpush.bf16.msra.mxu1 %v5124_v30 }
 0x1cf   :  { %v5470_v25 = vadd.f32 %v2690_v23, %v2678_v4  ;;  %v5140_v4 = vld [vmem:[#allocation6 + $0x80] sm:$0xff] }
 0x1d1   :  { %3135 = vmatpush.bf16.msrb.mxu3 %v5143_v6 }
 0x1d3   :  { %v2705_v29 = vpop.f32.mrf.mxu0 }
 0x1d5   :  { %3136 = vmatpush.bf16.msrb.mxu3 %v5142_v9 }
 0x1d6   :  { %v2692_v32 = vpop.f32.mrf.mxu1 }
 0x1d9   :  { %3137 = vmatpush.bf16.msrb.mxu3 %v5141_v17 }
 0x1dd   :  { %3138 = vmatpush.bf16.msrb.mxu3 %v5140_v4 }
 0x1e2   :  { %v2729_v53 = vpop.f32.mrf.mxu2 }
 0x1e3   :  { %v2716_v33 = vpop.f32.mrf.mxu3 }
 0x1e4   :  { %v2717_v35 = vadd.f32 %v2716_v33, %v2703_v22 }
 0x1e6   :  { %v2730_v34 = vadd.f32 %v2729_v53, %v2717_v35 }
 0x1ea   :  { %v2731_v37 = vpop.f32.mrf.mxu2 }
 0x1eb   :  { %v2755_v63 = vpop.f32.mrf.mxu0  ;;  %v2718_v42 = vpop.f32.mrf.mxu3 }
 0x1ee   :  { %v2742_v39 = vpop.f32.mrf.mxu1 }
 0x1ef   :  { %v2743_v41 = vadd.f32 %v2742_v39, %v2730_v34 }
 0x1f1   :  { %v2756_v44 = vadd.f32 %v2755_v63, %v2743_v41 }
 0x1f3   :  { %v2889_v48 = vmax.f32 %v5463_v56, %v2756_v44  ;;  %v2757_v49 = vpop.f32.mrf.mxu0  ;;  %v5132_v56 = vld [vmem:[#allocation6 + $0x40] sm:$0xff]  ;;  %v5155_v44 = vld [vmem:[#allocation7 + $0x38] sm:$0xff] }
 0x1f4   :  { %3125 = vmatpush.bf16.msra.mxu0 %v5132_v56  ;;  %3214 = vmatpush.bf16.msrb.mxu2 %v5155_v44  ;;  %v5152_v49 = vld [vmem:[#allocation7 + $0x20] sm:$0xff]  ;;  %v5167_v56 = vld [vmem:[%s5500_s8] ss:$0 sm:$0xff] }
 0x1f5   :  { %v2900_v51 = vadd.f32 %v2894_v47, %v2889_v48  ;;  %v5154_v47 = vld [vmem:[#allocation7 + $0x30] sm:$0xff]  ;;  %v5153_v48 = vld [vmem:[#allocation7 + $0x28] sm:$0xff] }
 0x1f6   :  { %v2744_v54 = vpop.f32.mrf.mxu1 }
 0x1f7   :  { %v2903_v58 = vmax.f32 %v2900_v51, 0.0  ;;  %v5149_v51 = vld [vmem:[#allocation7 + $0x8] sm:$0xff] }
 0x1f8   :  { %3215 = vmatpush.bf16.msrb.mxu2 %v5154_v47 }
 0x1f9   :  { %v2906_v60 = vpack.c.bf16 %v2903_v58, %v2903_v58  ;;  %v5166_v58 = vld [vmem:[%s5498_s6] ss:$0 sm:$0xff] }
 0x1fb   :  { %3113 = vmatmul.bf16.vlgmr.msra.gmra.mxu1 %v2906_v60 }
 0x1fc   :  { %3216 = vmatpush.bf16.msrb.mxu2 %v5153_v48 }
 0x200   :  { %3217 = vmatpush.bf16.msrb.mxu2 %v5152_v49 }
 0x202   :  { %v2781_v27 = vpop.f32.mrf.mxu2 }
 0x203   :  { %v2768_v10 = vpop.f32.mrf.mxu3 }
 0x204   :  { %v2782_v55 = vadd.f32 %v2781_v27, %v2768_v10  ;;  %3218 = vmatpush.bf16.msrb.mxu2 %v5151_v50 }
 0x20a   :  { %v2783_v0 = vpop.f32.mrf.mxu2 }
 0x20b   :  { %v2807_v36 = vpop.f32.mrf.mxu0  ;;  %v2770_v59 = vpop.f32.mrf.mxu3 }
 0x20e   :  { %v2794_v1 = vpop.f32.mrf.mxu1 }
 0x20f   :  { %v2795_v7 = vadd.f32 %v2794_v1, %v2782_v55 }
 0x211   :  { %v2808_v11 = vadd.f32 %v2807_v36, %v2795_v7 }
 0x213   :  { %v2809_v3 = vpop.f32.mrf.mxu0 }
 0x216   :  { %v2796_v38 = vpop.f32.mrf.mxu1 }
 0x222   :  { %v2833_v8 = vpop.f32.mrf.mxu2 }
 0x223   :  { %v2820_v16 = vpop.f32.mrf.mxu3 }
 0x224   :  { %v2821_v14 = vadd.f32 %v2820_v16, %v2808_v11 }
 0x226   :  { %v2890_v18 = vmax.f32 %v5468_v12, %v2821_v14  ;;  %v2896_v12 = vperm.slane %v5475_v40, 2  ;;  %v5150_v40 = vld [vmem:[#allocation7 + $0x10] sm:$0xff] }
 0x227   :  { %3219 = vmatpush.bf16.msrb.mxu2 %v5150_v40 }
 0x228   :  { %v2901_v13 = vadd.f32 %v2895_v46, %v2890_v18 }
 0x22a   :  { %v2835_v21 = vpop.f32.mrf.mxu2  ;;  %v2904_v22 = vmax.f32 %v2901_v13, 0.0 }
 0x22b   :  { %v2859_v20 = vpop.f32.mrf.mxu0  ;;  %v2822_v19 = vpop.f32.mrf.mxu3  ;;  %3220 = vmatpush.bf16.msrb.mxu2 %v5149_v51 }
 0x22c   :  { %v2907_v23 = vpack.c.bf16 %v2904_v22, %v2904_v22 }
 0x22e   :  { %v2846_v52 = vpop.f32.mrf.mxu1  ;;  %3126 = vmatmul.bf16.vlgmr.msra.gmra.mxu0 %v2907_v23 }
 0x22f   :  { %v2847_v29 = vadd.f32 %v2846_v52, %v2833_v8  ;;  %3221 = vmatpush.bf16.msrb.mxu2 %v5148_v57 }
 0x231   :  { %v2860_v32 = vadd.f32 %v2859_v20, %v2847_v29 }
 0x233   :  { %v2861_v26 = vpop.f32.mrf.mxu0 }
 0x236   :  { %v2848_v28 = vpop.f32.mrf.mxu1 }
 0x242   :  { %v2885_v30 = vpop.f32.mrf.mxu2 }
 0x243   :  { %v2872_v53 = vpop.f32.mrf.mxu3 }
 0x244   :  { %v2873_v33 = vadd.f32 %v2872_v53, %v2860_v32 }
 0x246   :  { %v2886_v35 = vadd.f32 %v2885_v30, %v2873_v33 }
 0x248   :  { %v2891_v63 = vmax.f32 %v5470_v25, %v2886_v35 }
 0x24a   :  { %v2887_v37 = vpop.f32.mrf.mxu2  ;;  %v2902_v45 = vadd.f32 %v2896_v12, %v2891_v63 }
 0x24b   :  { %v2874_v34 = vpop.f32.mrf.mxu3 }
 0x24c   :  { %v2905_v39 = vmax.f32 %v2902_v45, 0.0 }
 0x24e   :  { %v2908_v41 = vpack.c.bf16 %v2905_v39, %v2905_v39 }
 0x250   :  { %3139 = vmatmul.bf16.vlgmr.msrb.gmra.mxu3 %v2908_v41 }
 0x278   :  { %v3114_v42 = vpop.f32.mrf.mxu1 }
 0x279   :  { %v3115_v60 = vadd.f32 %v5166_v58, %v3114_v42 }
 0x280   :  { %v3116_v43 = vpop.f32.mrf.mxu1 }
 0x2ab   :  { %v3127_v25 = vpop.f32.mrf.mxu0 }
 0x2ac   :  { %v3128_v61 = vadd.f32 %v3127_v25, %v3115_v60 }
 0x2b3   :  { %v3129_v54 = vpop.f32.mrf.mxu0 }
 0x2d3   :  { %v3140_v31 = vpop.f32.mrf.mxu3 }
 0x2d4   :  { %v3141_v27 = vadd.f32 %v3140_v31, %v3128_v61 }
 0x2d6   :  { %v3144_v10 = vmax.f32 %v3141_v27, 0.0 }
 0x2d8   :  { %v3145_v62 = vpack.c.bf16 %v3144_v10, %v3144_v10 }
 0x2da   :  { %3222 = vmatmul.bf16.vlgmr.msrb.gmra.mxu2 %v3145_v62 }
 0x2db   :  { %v3142_v36 = vpop.f32.mrf.mxu3 }
 0x35d   :  { %v3223_v0 = vpop.f32.mrf.mxu2 }
 0x35e   :  { %v3224_v1 = vadd.f32 %v5167_v56, %v3223_v0 }
 0x360   :  { %v3227_v2 = vpack.c.bf16 %v3224_v1, %v3224_v1 }
 0x362   :  { %3228 = vst [vmem:[%s5501_s9] sm:$0xf] %v3227_v2 }
 0x365   :  { %v3225_v59 = vpop.f32.mrf.mxu2 }
 0x366   :  { %3233 = vsyncpa [#allocation3], 1 }
 0x367   :  { %3234 = vsyncpa [#allocation5], 1 }
 0x368   :  { %3235 = vsyncpa [#allocation8], 1 }

</bundles_post_ra>
